<compile_context>
chip_gen: v7x
topology: tpu7x:2x2x1
jax: 0.10.0
libtpu: 0.0.40
codegen_flags: <defaults>
</compile_context>

<pallas_src>
import jax
import jax.numpy as jnp
from jax.experimental import pallas as pl
from jax.experimental.pallas import tpu as pltpu

BN_EPS = 1e-5
MXU_DTYPE = jnp.bfloat16      # set to jnp.float32 for bit-closer f32 parity
_PAD = 8                      # sublane-aligned interior offset inside xpad
_ROW_TARGET = 512             # target TB*L (MXU rows) per grid step


# --------------------------- in-kernel building blocks ---------------------- #

def _conv3_bn(xpad_ref, x, w_ref, s_ref, b_ref, *, relu):
    """Conv1d(k=3, pad=1) + folded BN (+ ReLU).

    Three accumulating K=C MXU dots on shifted views of the zero-padded
    scratch.  Boundary rows of the scratch are permanently zero; interior rows
    are fully rewritten here (columns [:C]) before they are read.
    """
    TB, L, C = x.shape
    Cout = w_ref.shape[-1]
    rows = TB * L
    xc = x.astype(xpad_ref.dtype)
    xpad_ref[:, _PAD:_PAD + L, :C] = xc                       # aligned store
    xm = xpad_ref[:, _PAD - 1:_PAD - 1 + L, :C].reshape(rows, C)   # tap l-1
    xp = xpad_ref[:, _PAD + 1:_PAD + 1 + L, :C].reshape(rows, C)   # tap l+1
    y = jnp.dot(xm, w_ref[0], preferred_element_type=jnp.float32)
    y = y + jnp.dot(xc.reshape(rows, C), w_ref[1],
                    preferred_element_type=jnp.float32)
    y = y + jnp.dot(xp, w_ref[2], preferred_element_type=jnp.float32)
    y = y * s_ref[...] + b_ref[...]                           # folded BN, f32
    if relu:
        y = jnp.maximum(y, 0.0)
    return y.reshape(TB, L, Cout)


def _se_residual(x, path, w1_ref, w2g_ref, w2b_ref):
    """SEBlock (per-position 1x1 convs; gate/shift as two lane-aligned dots)
    + residual add + ReLU.

    Matches the PyTorch reference literally: SEBlock.forward discards the
    adaptive_avg_pool result and runs the excitation MLP on every position.
    """
    TB, L, C = x.shape
    rows = TB * L
    p32 = path.reshape(rows, C)
    p = p32.astype(MXU_DTYPE)
    h = jnp.maximum(jnp.dot(p, w1_ref[...],
                            preferred_element_type=jnp.float32), 0.0)
    h = h.astype(MXU_DTYPE)
    gate = jax.nn.sigmoid(jnp.dot(h, w2g_ref[...],
                                  preferred_element_type=jnp.float32))
    shift = jnp.dot(h, w2b_ref[...], preferred_element_type=jnp.float32)
    out = jnp.maximum(x.reshape(rows, C) + p32 * gate + shift, 0.0)
    return out.reshape(TB, L, C)


def _head(x, wo_ref, so_ref, bo_ref, wfc_ref, bfc_ref):
    """out_conv(1x1) + BN + ReLU -> global average pool -> fc -> log_softmax."""
    TB, L, C = x.shape
    D = wo_ref.shape[-1]                                      # 128
    h = jnp.dot(x.reshape(TB * L, C).astype(MXU_DTYPE), wo_ref[...],
                preferred_element_type=jnp.float32)
    h = jnp.maximum(h * so_ref[...] + bo_ref[...], 0.0)
    pooled = jnp.mean(h.reshape(TB, L, D), axis=1)            # (TB, 128), f32
    logits = jnp.dot(pooled, wfc_ref[...],
                     preferred_element_type=jnp.float32) + bfc_ref[...]
    m = jnp.max(logits, axis=-1, keepdims=True)
    z = logits - m
    lse = jnp.log(jnp.sum(jnp.exp(z), axis=-1, keepdims=True))
    return z - lse                                            # (TB, num_classes)


# --------------------------------- kernel ----------------------------------- #

def _fused_kernel(x_ref, *refs):
    # refs = [stem: w, s, b,
    #         per res block: w_lower, s_l, b_l, w_upper, s_u, b_u,
    #                        w_se1, w_se2_gate, w_se2_shift,
    #         head: out_w, out_s, out_b, fc_w, fc_b,
    #         out_ref, xpad_scratch]
    xpad_ref = refs[-1]
    out_ref = refs[-2]
    p = refs[:-2]
    num_res = (len(p) - 8) // 9

    # Zero only the 8+8 boundary rows; interior rows (columns [:C]) are fully
    # rewritten by every conv before being read.  Re-zeroed every step so the
    # kernel is correct under megacore "parallel" grid sharding.
    TB, LP, CP = xpad_ref.shape
    zeros = jnp.zeros((TB, _PAD, CP), xpad_ref.dtype)
    xpad_ref[:, 0:_PAD, :] = zeros
    xpad_ref[:, LP - _PAD:LP, :] = zeros

    x = x_ref[...].astype(jnp.float32)                        # (TB, L, Cin)

    # Stem: conv3 + BN + ReLU.
    x = _conv3_bn(xpad_ref, x, p[0], p[1], p[2], relu=True)

    # Residual SE blocks, fully VMEM-resident.
    i = 3
    for _ in range(num_res):
        wl, sl, bl, wu, su, bu, w1, w2g, w2b = p[i:i + 9]
        i += 9
        path = _conv3_bn(xpad_ref, x, wl, sl, bl, relu=True)
        path = _conv3_bn(xpad_ref, path, wu, su, bu, relu=False)
        x = _se_residual(x, path, w1, w2g, w2b)

    # Head.
    wo, so, bo, wfc, bfc = p[i:i + 5]
    out = _head(x, wo, so, bo, wfc, bfc)
    out_ref[...] = out.reshape(out_ref.shape).astype(out_ref.dtype)


# -------------------------------- wrappers ---------------------------------- #

def _resident_spec(arr):
    # Full-array block, same block every grid step (stays VMEM-resident).
    return pl.BlockSpec(arr.shape, lambda i, _z=(0,) * arr.ndim: _z)


def _vmem_cap_bytes():
    try:
        phys = int(pltpu.get_tpu_info().vmem_capacity_bytes)
    except Exception:
        phys = 64 << 20                        # conservative (v7x per-core VMEM)
    return int(min(phys * 3 // 4, 96 << 20))


def _pick_batch_tile(B, L, per_sample_bytes, budget):
    tb = max(1, min(B, pl.cdiv(_ROW_TARGET, max(L, 1))))   # fill MXU rows
    if B > 1:
        tb = min(tb, max(1, B // 2))           # keep >=2 grid steps: pipelining
                                               # and both v7x TensorCores busy
    tb = max(1, min(tb, max(1, budget // max(per_sample_bytes, 1))))
    while B % tb:                              # keep the grid even
        tb -= 1
    return tb


def multi_message_fusion(params, x_ncl):
    """Forward pass.  x_ncl: (B, in_channel, L) in PyTorch NCL layout."""
    x = jnp.transpose(x_ncl, (0, 2, 1))                        # -> (B, L, Cin)
    B, L, Cin = x.shape
    filters = params["conv_w"].shape[-1]
    num_classes = params["fc_w"].shape[-1]
    c_pad = max(Cin, filters)

    # Flatten / pre-pack parameters.  Matmul weights go to the MXU dtype once
    # here (half the DMA + resident bytes, no per-step recast); BN scale/bias
    # and the fc stay f32.
    def wcast(w):
        return w.astype(MXU_DTYPE)

    plist = [wcast(params["conv_w"]), params["conv_scale"], params["conv_bias"]]
    for r in params["res_blocks"]:
        cr = r["w_se1"].shape[-1]
        cr_pad = max(8, cr)                    # avoid degenerate MXU K (exact)
        w1, w2g, w2b = r["w_se1"], r["w_se2_gate"], r["w_se2_shift"]
        if cr_pad != cr:                       # zero padding: numerically exact
            w1 = jnp.pad(w1, ((0, 0), (0, cr_pad - cr)))
            w2g = jnp.pad(w2g, ((0, cr_pad - cr), (0, 0)))
            w2b = jnp.pad(w2b, ((0, cr_pad - cr), (0, 0)))
        plist += [wcast(r["w_lower"]), r["s_lower"], r["b_lower"],
                  wcast(r["w_upper"]), r["s_upper"], r["b_upper"],
                  wcast(w1), wcast(w2g), wcast(w2b)]
    plist += [wcast(params["out_conv_w"]), params["out_scale"],
              params["out_bias"], params["fc_w"], params["fc_b"]]

    weight_bytes = sum(int(a.size) * a.dtype.itemsize for a in plist)
    mxu_bytes = jnp.dtype(MXU_DTYPE).itemsize
    per_sample = (
        (L + 2 * _PAD) * c_pad * mxu_bytes      # bf16 conv-pad scratch
        + 2 * L * Cin * x.dtype.itemsize        # double-buffered input tile
        + 6 * L * max(filters, 128) * 4         # live f32 activations (slack)
    )
    cap = _vmem_cap_bytes()
    budget = max(1 << 20, cap - 2 * weight_bytes - (8 << 20))
    TB = _pick_batch_tile(B, L, per_sample, budget)
    grid = (B // TB,)

    out = pl.pallas_call(
        _fused_kernel,
        out_shape=jax.ShapeDtypeStruct((B, 1, num_classes), jnp.float32),
        grid_spec=pltpu.PrefetchScalarGridSpec(
            num_scalar_prefetch=0,
            grid=grid,
            in_specs=[pl.BlockSpec((TB, L, Cin), lambda i: (i, 0, 0))]
                     + [_resident_spec(a) for a in plist],
            out_specs=pl.BlockSpec((TB, 1, num_classes), lambda i: (i, 0, 0)),
            scratch_shapes=[pltpu.VMEM((TB, L + 2 * _PAD, c_pad), MXU_DTYPE)],
        ),
        compiler_params=pltpu.CompilerParams(
            dimension_semantics=("parallel",),
            vmem_limit_bytes=cap,
        ),
    )(x, *plist)
    return out[:, 0, :]


# --------------------------- parameters (random init) ------------------------ #

def _bn_fold(key, c):
    gamma = 1.0 + 0.1 * jax.random.normal(key, (c,), jnp.float32)
    beta = 0.1 * jax.random.normal(jax.random.fold_in(key, 1), (c,), jnp.float32)
    mean = jnp.zeros((c,), jnp.float32)
    var = jnp.ones((c,), jnp.float32)
    scale = gamma / jnp.sqrt(var + BN_EPS)
    bias = beta - mean * scale
    return scale.reshape(1, c), bias.reshape(1, c)


def init_params(key, in_channel, filters, blocks, num_classes, reduction=16):
    keys = iter(jax.random.split(key, 256))
    nrm = lambda k, shape: 0.1 * jax.random.normal(k, shape, jnp.float32)

    params = {}
    # Conv1d(k=3) weights stored tap-major as (3, Cin, Cout):
    #   w[k, ci, co] == torch_weight[co, ci, k]   (i.e. weight.permute(2, 1, 0)).
    params["conv_w"] = nrm(next(keys), (3, in_channel, filters))
    params["conv_scale"], params["conv_bias"] = _bn_fold(next(keys), filters)

    cr = max(1, filters // reduction)
    res = []
    for _ in range(blocks - 1):
        r = {}
        r["w_lower"] = nrm(next(keys), (3, filters, filters))
        r["s_lower"], r["b_lower"] = _bn_fold(next(keys), filters)
        r["w_upper"] = nrm(next(keys), (3, filters, filters))
        r["s_upper"], r["b_upper"] = _bn_fold(next(keys), filters)
        r["w_se1"] = nrm(next(keys), (filters, cr))
        # PyTorch SE second conv outputs 2*filters channels, split into the
        # sigmoid gate ([:filters]) and the additive bias ([filters:]).
        r["w_se2_gate"] = nrm(next(keys), (cr, filters))
        r["w_se2_shift"] = nrm(next(keys), (cr, filters))
        res.append(r)
    params["res_blocks"] = res

    params["out_conv_w"] = nrm(next(keys), (filters, 128))
    params["out_scale"], params["out_bias"] = _bn_fold(next(keys), 128)
    params["fc_w"] = nrm(next(keys), (128, num_classes))
    params["fc_b"] = nrm(next(keys), (1, num_classes))
    return params


# ----------------------- pure-JAX reference (f32) ---------------------------- #

def reference_forward(params, x_ncl):
    x = jnp.transpose(x_ncl, (0, 2, 1)).astype(jnp.float32)    # (B, L, Cin)

    def conv3_bn(x, w, s, b, relu):
        B, L, C = x.shape
        xp = jnp.pad(x, ((0, 0), (1, 1), (0, 0)))
        y = (jnp.einsum("blc,co->blo", xp[:, 0:L], w[0])
             + jnp.einsum("blc,co->blo", xp[:, 1:L + 1], w[1])
             + jnp.einsum("blc,co->blo", xp[:, 2:L + 2], w[2]))
        y = y * s.reshape(1, 1, -1) + b.reshape(1, 1, -1)
        return jnp.maximum(y, 0.0) if relu else y

    x = conv3_bn(x, params["conv_w"], params["conv_scale"],
                 params["conv_bias"], True)
    for r in params["res_blocks"]:
        path = conv3_bn(x, r["w_lower"], r["s_lower"], r["b_lower"], True)
        path = conv3_bn(path, r["w_upper"], r["s_upper"], r["b_upper"], False)
        h = jnp.maximum(jnp.einsum("blc,cr->blr", path, r["w_se1"]), 0.0)
        gate = jax.nn.sigmoid(jnp.einsum("blr,rc->blc", h, r["w_se2_gate"]))
        shift = jnp.einsum("blr,rc->blc", h, r["w_se2_shift"])
        x = jnp.maximum(x + path * gate + shift, 0.0)
    h = jnp.einsum("blc,cd->bld", x, params["out_conv_w"])
    h = jnp.maximum(h * params["out_scale"].reshape(1, 1, -1)
                    + params["out_bias"].reshape(1, 1, -1), 0.0)
    pooled = h.mean(axis=1)
    logits = pooled @ params["fc_w"] + params["fc_b"]
    return jax.nn.log_softmax(logits, axis=-1)


# ----------------------------------- main ------------------------------------ #

if __name__ == "__main__":
    B, Cin, L = 2, 4, 16
    filters, blocks, num_classes = 32, 2, 4

    key = jax.random.PRNGKey(0)
    kx, kp = jax.random.split(key)
    x = jax.random.normal(kx, (B, Cin, L), jnp.float32)
    params = init_params(kp, Cin, filters, blocks, num_classes)

    out = jax.jit(lambda a: multi_message_fusion(params, a))(x)
    out = jax.block_until_ready(out)

    assert out.shape == (B, num_classes)
    # rows of exp(log_softmax) must sum to 1
    assert jnp.allclose(jnp.exp(out).sum(axis=1), 1.0, atol=1e-4)
    # bf16 MXU operands -> loose tolerance against the f32 reference
    ref = reference_forward(params, x)
    assert float(jnp.max(jnp.abs(out - ref))) < 5e-2
    print("KERNEL_OK")
</pallas_src>

<mosaic_0001>
module attributes {stable_mosaic.version = 11 : i64} {
  func.func @_fused_kernel(%arg0: i32, %arg1: memref<1x16x4xf32, #tpu.memory_space<vmem>>, %arg2: memref<3x4x32xbf16, #tpu.memory_space<vmem>>, %arg3: memref<1x32xf32, #tpu.memory_space<vmem>>, %arg4: memref<1x32xf32, #tpu.memory_space<vmem>>, %arg5: memref<3x32x32xbf16, #tpu.memory_space<vmem>>, %arg6: memref<1x32xf32, #tpu.memory_space<vmem>>, %arg7: memref<1x32xf32, #tpu.memory_space<vmem>>, %arg8: memref<3x32x32xbf16, #tpu.memory_space<vmem>>, %arg9: memref<1x32xf32, #tpu.memory_space<vmem>>, %arg10: memref<1x32xf32, #tpu.memory_space<vmem>>, %arg11: memref<32x8xbf16, #tpu.memory_space<vmem>>, %arg12: memref<8x32xbf16, #tpu.memory_space<vmem>>, %arg13: memref<8x32xbf16, #tpu.memory_space<vmem>>, %arg14: memref<32x128xbf16, #tpu.memory_space<vmem>>, %arg15: memref<1x128xf32, #tpu.memory_space<vmem>>, %arg16: memref<1x128xf32, #tpu.memory_space<vmem>>, %arg17: memref<128x4xf32, #tpu.memory_space<vmem>>, %arg18: memref<1x4xf32, #tpu.memory_space<vmem>>, %arg19: memref<1x1x4xf32, #tpu.memory_space<vmem>>, %arg20: memref<1x32x32xbf16, #tpu.memory_space<vmem>>) attributes {dimension_semantics = [#tpu.dimension_semantics<parallel>], iteration_bounds = array<i64: 2>, scalar_prefetch = 0 : i64, scratch_operands = 1 : i64, tpu.core_type = #tpu.core_type<tc>, window_params = [{transform_indices = @transform_0, window_bounds = array<i64: 1, 16, 4>}, {pipeline_mode = #tpu.pipeline_mode<synchronous>, transform_indices = @transform_1, window_bounds = array<i64: 3, 4, 32>}, {pipeline_mode = #tpu.pipeline_mode<synchronous>, transform_indices = @transform_2, window_bounds = array<i64: 1, 32>}, {pipeline_mode = #tpu.pipeline_mode<synchronous>, transform_indices = @transform_3, window_bounds = array<i64: 1, 32>}, {pipeline_mode = #tpu.pipeline_mode<synchronous>, transform_indices = @transform_4, window_bounds = array<i64: 3, 32, 32>}, {pipeline_mode = #tpu.pipeline_mode<synchronous>, transform_indices = @transform_5, window_bounds = array<i64: 1, 32>}, {pipeline_mode = #tpu.pipeline_mode<synchronous>, transform_indices = @transform_6, window_bounds = array<i64: 1, 32>}, {pipeline_mode = #tpu.pipeline_mode<synchronous>, transform_indices = @transform_7, window_bounds = array<i64: 3, 32, 32>}, {pipeline_mode = #tpu.pipeline_mode<synchronous>, transform_indices = @transform_8, window_bounds = array<i64: 1, 32>}, {pipeline_mode = #tpu.pipeline_mode<synchronous>, transform_indices = @transform_9, window_bounds = array<i64: 1, 32>}, {pipeline_mode = #tpu.pipeline_mode<synchronous>, transform_indices = @transform_10, window_bounds = array<i64: 32, 8>}, {pipeline_mode = #tpu.pipeline_mode<synchronous>, transform_indices = @transform_11, window_bounds = array<i64: 8, 32>}, {pipeline_mode = #tpu.pipeline_mode<synchronous>, transform_indices = @transform_12, window_bounds = array<i64: 8, 32>}, {pipeline_mode = #tpu.pipeline_mode<synchronous>, transform_indices = @transform_13, window_bounds = array<i64: 32, 128>}, {pipeline_mode = #tpu.pipeline_mode<synchronous>, transform_indices = @transform_14, window_bounds = array<i64: 1, 128>}, {pipeline_mode = #tpu.pipeline_mode<synchronous>, transform_indices = @transform_15, window_bounds = array<i64: 1, 128>}, {pipeline_mode = #tpu.pipeline_mode<synchronous>, transform_indices = @transform_16, window_bounds = array<i64: 128, 4>}, {pipeline_mode = #tpu.pipeline_mode<synchronous>, transform_indices = @transform_17, window_bounds = array<i64: 1, 4>}, {transform_indices = @transform_18, window_bounds = array<i64: 1, 1, 4>}]} {
    %cst = arith.constant 0.000000e+00 : bf16
    %0 = vector.broadcast %cst : bf16 to vector<1x8x32xbf16>
    %c0 = arith.constant 0 : index
    %c0_0 = arith.constant 0 : index
    %c0_1 = arith.constant 0 : index
    %1 = vector.load %arg20[%c0, %c0_0, %c0_1] : memref<1x32x32xbf16, #tpu.memory_space<vmem>>, vector<1x8x32xbf16>
    tpu.vector_store %arg20[%c0, %c0_0, %c0_1], %0 {strides = array<i32>} : memref<1x32x32xbf16, #tpu.memory_space<vmem>>, vector<1x8x32xbf16>,
    %c0_2 = arith.constant 0 : index
    %c24 = arith.constant 24 : index
    %c0_3 = arith.constant 0 : index
    %2 = vector.load %arg20[%c0_2, %c24, %c0_3] : memref<1x32x32xbf16, #tpu.memory_space<vmem>>, vector<1x8x32xbf16>
    tpu.vector_store %arg20[%c0_2, %c24, %c0_3], %0 {strides = array<i32>} : memref<1x32x32xbf16, #tpu.memory_space<vmem>>, vector<1x8x32xbf16>,
    %c0_4 = arith.constant 0 : index
    %c0_5 = arith.constant 0 : index
    %c0_6 = arith.constant 0 : index
    %3 = vector.load %arg1[%c0_4, %c0_5, %c0_6] : memref<1x16x4xf32, #tpu.memory_space<vmem>>, vector<1x16x4xf32>
    %4 = arith.truncf %3 : vector<1x16x4xf32> to vector<1x16x4xbf16>
    %c0_7 = arith.constant 0 : index
    %c8 = arith.constant 8 : index
    %c0_8 = arith.constant 0 : index
    %5 = vector.load %arg20[%c0_7, %c8, %c0_8] : memref<1x32x32xbf16, #tpu.memory_space<vmem>>, vector<1x16x4xbf16>
    tpu.vector_store %arg20[%c0_7, %c8, %c0_8], %4 {strides = array<i32>} : memref<1x32x32xbf16, #tpu.memory_space<vmem>>, vector<1x16x4xbf16>,
    %c0_9 = arith.constant 0 : index
    %c7 = arith.constant 7 : index
    %c0_10 = arith.constant 0 : index
    %6 = vector.load %arg20[%c0_9, %c7, %c0_10] : memref<1x32x32xbf16, #tpu.memory_space<vmem>>, vector<1x16x4xbf16>
    %7 = vector.shape_cast %6 : vector<1x16x4xbf16> to vector<16x4xbf16>
    %c0_11 = arith.constant 0 : index
    %c9 = arith.constant 9 : index
    %c0_12 = arith.constant 0 : index
    %8 = vector.load %arg20[%c0_11, %c9, %c0_12] : memref<1x32x32xbf16, #tpu.memory_space<vmem>>, vector<1x16x4xbf16>
    %9 = vector.shape_cast %8 : vector<1x16x4xbf16> to vector<16x4xbf16>
    %c0_13 = arith.constant 0 : index
    %c0_14 = arith.constant 0 : index
    %c0_15 = arith.constant 0 : index
    %10 = vector.load %arg2[%c0_13, %c0_14, %c0_15] : memref<3x4x32xbf16, #tpu.memory_space<vmem>>, vector<1x4x32xbf16>
    %11 = vector.shape_cast %10 : vector<1x4x32xbf16> to vector<4x32xbf16>
    %cst_16 = arith.constant dense<0.000000e+00> : vector<16x32xf32>
    %12 = tpu.matmul %7, %11, %cst_16 {dimension_numbers = #tpu.dot_dimension_numbers<[1], [0], [0], [1], [0, 0, 1, 1], [], []>} : vector<16x4xbf16>, vector<4x32xbf16>, vector<16x32xf32> -> vector<16x32xf32>
    %13 = vector.shape_cast %4 : vector<1x16x4xbf16> to vector<16x4xbf16>
    %c1 = arith.constant 1 : index
    %c0_17 = arith.constant 0 : index
    %c0_18 = arith.constant 0 : index
    %14 = vector.load %arg2[%c1, %c0_17, %c0_18] : memref<3x4x32xbf16, #tpu.memory_space<vmem>>, vector<1x4x32xbf16>
    %15 = vector.shape_cast %14 : vector<1x4x32xbf16> to vector<4x32xbf16>
    %cst_19 = arith.constant dense<0.000000e+00> : vector<16x32xf32>
    %16 = tpu.matmul %13, %15, %cst_19 {dimension_numbers = #tpu.dot_dimension_numbers<[1], [0], [0], [1], [0, 0, 1, 1], [], []>} : vector<16x4xbf16>, vector<4x32xbf16>, vector<16x32xf32> -> vector<16x32xf32>
    %17 = arith.addf %12, %16 : vector<16x32xf32>
    %c2 = arith.constant 2 : index
    %c0_20 = arith.constant 0 : index
    %c0_21 = arith.constant 0 : index
    %18 = vector.load %arg2[%c2, %c0_20, %c0_21] : memref<3x4x32xbf16, #tpu.memory_space<vmem>>, vector<1x4x32xbf16>
    %19 = vector.shape_cast %18 : vector<1x4x32xbf16> to vector<4x32xbf16>
    %cst_22 = arith.constant dense<0.000000e+00> : vector<16x32xf32>
    %20 = tpu.matmul %9, %19, %cst_22 {dimension_numbers = #tpu.dot_dimension_numbers<[1], [0], [0], [1], [0, 0, 1, 1], [], []>} : vector<16x4xbf16>, vector<4x32xbf16>, vector<16x32xf32> -> vector<16x32xf32>
    %21 = arith.addf %17, %20 : vector<16x32xf32>
    %c0_23 = arith.constant 0 : index
    %c0_24 = arith.constant 0 : index
    %22 = vector.load %arg3[%c0_23, %c0_24] : memref<1x32xf32, #tpu.memory_space<vmem>>, vector<1x32xf32>
    %23 = vector.broadcast %22 : vector<1x32xf32> to vector<16x32xf32>
    %24 = arith.mulf %21, %23 : vector<16x32xf32>
    %c0_25 = arith.constant 0 : index
    %c0_26 = arith.constant 0 : index
    %25 = vector.load %arg4[%c0_25, %c0_26] : memref<1x32xf32, #tpu.memory_space<vmem>>, vector<1x32xf32>
    %26 = vector.broadcast %25 : vector<1x32xf32> to vector<16x32xf32>
    %27 = arith.addf %24, %26 : vector<16x32xf32>
    %cst_27 = arith.constant 0.000000e+00 : f32
    %28 = vector.broadcast %cst_27 : f32 to vector<16x32xf32>
    %29 = arith.maximumf %27, %28 : vector<16x32xf32>
    %30 = vector.shape_cast %29 : vector<16x32xf32> to vector<1x16x32xf32>
    %31 = arith.truncf %30 : vector<1x16x32xf32> to vector<1x16x32xbf16>
    %c0_28 = arith.constant 0 : index
    %c8_29 = arith.constant 8 : index
    %c0_30 = arith.constant 0 : index
    %32 = vector.load %arg20[%c0_28, %c8_29, %c0_30] : memref<1x32x32xbf16, #tpu.memory_space<vmem>>, vector<1x16x32xbf16>
    tpu.vector_store %arg20[%c0_28, %c8_29, %c0_30], %31 {strides = array<i32>} : memref<1x32x32xbf16, #tpu.memory_space<vmem>>, vector<1x16x32xbf16>,
    %c0_31 = arith.constant 0 : index
    %c7_32 = arith.constant 7 : index
    %c0_33 = arith.constant 0 : index
    %33 = vector.load %arg20[%c0_31, %c7_32, %c0_33] : memref<1x32x32xbf16, #tpu.memory_space<vmem>>, vector<1x16x32xbf16>
    %34 = vector.shape_cast %33 : vector<1x16x32xbf16> to vector<16x32xbf16>
    %c0_34 = arith.constant 0 : index
    %c9_35 = arith.constant 9 : index
    %c0_36 = arith.constant 0 : index
    %35 = vector.load %arg20[%c0_34, %c9_35, %c0_36] : memref<1x32x32xbf16, #tpu.memory_space<vmem>>, vector<1x16x32xbf16>
    %36 = vector.shape_cast %35 : vector<1x16x32xbf16> to vector<16x32xbf16>
    %c0_37 = arith.constant 0 : index
    %c0_38 = arith.constant 0 : index
    %c0_39 = arith.constant 0 : index
    %37 = vector.load %arg5[%c0_37, %c0_38, %c0_39] : memref<3x32x32xbf16, #tpu.memory_space<vmem>>, vector<1x32x32xbf16>
    %38 = vector.shape_cast %37 : vector<1x32x32xbf16> to vector<32x32xbf16>
    %cst_40 = arith.constant dense<0.000000e+00> : vector<16x32xf32>
    %39 = tpu.matmul %34, %38, %cst_40 {dimension_numbers = #tpu.dot_dimension_numbers<[1], [0], [0], [1], [0, 0, 1, 1], [], []>} : vector<16x32xbf16>, vector<32x32xbf16>, vector<16x32xf32> -> vector<16x32xf32>
    %40 = vector.shape_cast %31 : vector<1x16x32xbf16> to vector<16x32xbf16>
    %c1_41 = arith.constant 1 : index
    %c0_42 = arith.constant 0 : index
    %c0_43 = arith.constant 0 : index
    %41 = vector.load %arg5[%c1_41, %c0_42, %c0_43] : memref<3x32x32xbf16, #tpu.memory_space<vmem>>, vector<1x32x32xbf16>
    %42 = vector.shape_cast %41 : vector<1x32x32xbf16> to vector<32x32xbf16>
    %cst_44 = arith.constant dense<0.000000e+00> : vector<16x32xf32>
    %43 = tpu.matmul %40, %42, %cst_44 {dimension_numbers = #tpu.dot_dimension_numbers<[1], [0], [0], [1], [0, 0, 1, 1], [], []>} : vector<16x32xbf16>, vector<32x32xbf16>, vector<16x32xf32> -> vector<16x32xf32>
    %44 = arith.addf %39, %43 : vector<16x32xf32>
    %c2_45 = arith.constant 2 : index
    %c0_46 = arith.constant 0 : index
    %c0_47 = arith.constant 0 : index
    %45 = vector.load %arg5[%c2_45, %c0_46, %c0_47] : memref<3x32x32xbf16, #tpu.memory_space<vmem>>, vector<1x32x32xbf16>
    %46 = vector.shape_cast %45 : vector<1x32x32xbf16> to vector<32x32xbf16>
    %cst_48 = arith.constant dense<0.000000e+00> : vector<16x32xf32>
    %47 = tpu.matmul %36, %46, %cst_48 {dimension_numbers = #tpu.dot_dimension_numbers<[1], [0], [0], [1], [0, 0, 1, 1], [], []>} : vector<16x32xbf16>, vector<32x32xbf16>, vector<16x32xf32> -> vector<16x32xf32>
    %48 = arith.addf %44, %47 : vector<16x32xf32>
    %c0_49 = arith.constant 0 : index
    %c0_50 = arith.constant 0 : index
    %49 = vector.load %arg6[%c0_49, %c0_50] : memref<1x32xf32, #tpu.memory_space<vmem>>, vector<1x32xf32>
    %50 = vector.broadcast %49 : vector<1x32xf32> to vector<16x32xf32>
    %51 = arith.mulf %48, %50 : vector<16x32xf32>
    %c0_51 = arith.constant 0 : index
    %c0_52 = arith.constant 0 : index
    %52 = vector.load %arg7[%c0_51, %c0_52] : memref<1x32xf32, #tpu.memory_space<vmem>>, vector<1x32xf32>
    %53 = vector.broadcast %52 : vector<1x32xf32> to vector<16x32xf32>
    %54 = arith.addf %51, %53 : vector<16x32xf32>
    %cst_53 = arith.constant 0.000000e+00 : f32
    %55 = vector.broadcast %cst_53 : f32 to vector<16x32xf32>
    %56 = arith.maximumf %54, %55 : vector<16x32xf32>
    %57 = vector.shape_cast %56 : vector<16x32xf32> to vector<1x16x32xf32>
    %58 = arith.truncf %57 : vector<1x16x32xf32> to vector<1x16x32xbf16>
    %c0_54 = arith.constant 0 : index
    %c8_55 = arith.constant 8 : index
    %c0_56 = arith.constant 0 : index
    %59 = vector.load %arg20[%c0_54, %c8_55, %c0_56] : memref<1x32x32xbf16, #tpu.memory_space<vmem>>, vector<1x16x32xbf16>
    tpu.vector_store %arg20[%c0_54, %c8_55, %c0_56], %58 {strides = array<i32>} : memref<1x32x32xbf16, #tpu.memory_space<vmem>>, vector<1x16x32xbf16>,
    %c0_57 = arith.constant 0 : index
    %c7_58 = arith.constant 7 : index
    %c0_59 = arith.constant 0 : index
    %60 = vector.load %arg20[%c0_57, %c7_58, %c0_59] : memref<1x32x32xbf16, #tpu.memory_space<vmem>>, vector<1x16x32xbf16>
    %61 = vector.shape_cast %60 : vector<1x16x32xbf16> to vector<16x32xbf16>
    %c0_60 = arith.constant 0 : index
    %c9_61 = arith.constant 9 : index
    %c0_62 = arith.constant 0 : index
    %62 = vector.load %arg20[%c0_60, %c9_61, %c0_62] : memref<1x32x32xbf16, #tpu.memory_space<vmem>>, vector<1x16x32xbf16>
    %63 = vector.shape_cast %62 : vector<1x16x32xbf16> to vector<16x32xbf16>
    %c0_63 = arith.constant 0 : index
    %c0_64 = arith.constant 0 : index
    %c0_65 = arith.constant 0 : index
    %64 = vector.load %arg8[%c0_63, %c0_64, %c0_65] : memref<3x32x32xbf16, #tpu.memory_space<vmem>>, vector<1x32x32xbf16>
    %65 = vector.shape_cast %64 : vector<1x32x32xbf16> to vector<32x32xbf16>
    %cst_66 = arith.constant dense<0.000000e+00> : vector<16x32xf32>
    %66 = tpu.matmul %61, %65, %cst_66 {dimension_numbers = #tpu.dot_dimension_numbers<[1], [0], [0], [1], [0, 0, 1, 1], [], []>} : vector<16x32xbf16>, vector<32x32xbf16>, vector<16x32xf32> -> vector<16x32xf32>
    %67 = vector.shape_cast %58 : vector<1x16x32xbf16> to vector<16x32xbf16>
    %c1_67 = arith.constant 1 : index
    %c0_68 = arith.constant 0 : index
    %c0_69 = arith.constant 0 : index
    %68 = vector.load %arg8[%c1_67, %c0_68, %c0_69] : memref<3x32x32xbf16, #tpu.memory_space<vmem>>, vector<1x32x32xbf16>
    %69 = vector.shape_cast %68 : vector<1x32x32xbf16> to vector<32x32xbf16>
    %cst_70 = arith.constant dense<0.000000e+00> : vector<16x32xf32>
    %70 = tpu.matmul %67, %69, %cst_70 {dimension_numbers = #tpu.dot_dimension_numbers<[1], [0], [0], [1], [0, 0, 1, 1], [], []>} : vector<16x32xbf16>, vector<32x32xbf16>, vector<16x32xf32> -> vector<16x32xf32>
    %71 = arith.addf %66, %70 : vector<16x32xf32>
    %c2_71 = arith.constant 2 : index
    %c0_72 = arith.constant 0 : index
    %c0_73 = arith.constant 0 : index
    %72 = vector.load %arg8[%c2_71, %c0_72, %c0_73] : memref<3x32x32xbf16, #tpu.memory_space<vmem>>, vector<1x32x32xbf16>
    %73 = vector.shape_cast %72 : vector<1x32x32xbf16> to vector<32x32xbf16>
    %cst_74 = arith.constant dense<0.000000e+00> : vector<16x32xf32>
    %74 = tpu.matmul %63, %73, %cst_74 {dimension_numbers = #tpu.dot_dimension_numbers<[1], [0], [0], [1], [0, 0, 1, 1], [], []>} : vector<16x32xbf16>, vector<32x32xbf16>, vector<16x32xf32> -> vector<16x32xf32>
    %75 = arith.addf %71, %74 : vector<16x32xf32>
    %c0_75 = arith.constant 0 : index
    %c0_76 = arith.constant 0 : index
    %76 = vector.load %arg9[%c0_75, %c0_76] : memref<1x32xf32, #tpu.memory_space<vmem>>, vector<1x32xf32>
    %77 = vector.broadcast %76 : vector<1x32xf32> to vector<16x32xf32>
    %78 = arith.mulf %75, %77 : vector<16x32xf32>
    %c0_77 = arith.constant 0 : index
    %c0_78 = arith.constant 0 : index
    %79 = vector.load %arg10[%c0_77, %c0_78] : memref<1x32xf32, #tpu.memory_space<vmem>>, vector<1x32xf32>
    %80 = vector.broadcast %79 : vector<1x32xf32> to vector<16x32xf32>
    %81 = arith.addf %78, %80 : vector<16x32xf32>
    %82 = vector.shape_cast %81 : vector<16x32xf32> to vector<1x16x32xf32>
    %83 = vector.shape_cast %82 : vector<1x16x32xf32> to vector<16x32xf32>
    %84 = arith.truncf %83 : vector<16x32xf32> to vector<16x32xbf16>
    %c0_79 = arith.constant 0 : index
    %c0_80 = arith.constant 0 : index
    %85 = vector.load %arg11[%c0_79, %c0_80] : memref<32x8xbf16, #tpu.memory_space<vmem>>, vector<32x8xbf16>
    %cst_81 = arith.constant dense<0.000000e+00> : vector<16x8xf32>
    %86 = tpu.matmul %84, %85, %cst_81 {dimension_numbers = #tpu.dot_dimension_numbers<[1], [0], [0], [1], [0, 0, 1, 1], [], []>} : vector<16x32xbf16>, vector<32x8xbf16>, vector<16x8xf32> -> vector<16x8xf32>
    %cst_82 = arith.constant 0.000000e+00 : f32
    %87 = vector.broadcast %cst_82 : f32 to vector<16x8xf32>
    %88 = arith.maximumf %86, %87 : vector<16x8xf32>
    %89 = arith.truncf %88 : vector<16x8xf32> to vector<16x8xbf16>
    %c0_83 = arith.constant 0 : index
    %c0_84 = arith.constant 0 : index
    %90 = vector.load %arg12[%c0_83, %c0_84] : memref<8x32xbf16, #tpu.memory_space<vmem>>, vector<8x32xbf16>
    %cst_85 = arith.constant dense<0.000000e+00> : vector<16x32xf32>
    %91 = tpu.matmul %89, %90, %cst_85 {dimension_numbers = #tpu.dot_dimension_numbers<[1], [0], [0], [1], [0, 0, 1, 1], [], []>} : vector<16x8xbf16>, vector<8x32xbf16>, vector<16x32xf32> -> vector<16x32xf32>
    %92 = arith.negf %91 : vector<16x32xf32>
    %93 = math.exp %92 : vector<16x32xf32>
    %cst_86 = arith.constant 1.000000e+00 : f32
    %94 = vector.broadcast %cst_86 : f32 to vector<16x32xf32>
    %95 = arith.addf %94, %93 : vector<16x32xf32>
    %96 = arith.divf %94, %95 : vector<16x32xf32>
    %c0_87 = arith.constant 0 : index
    %c0_88 = arith.constant 0 : index
    %97 = vector.load %arg13[%c0_87, %c0_88] : memref<8x32xbf16, #tpu.memory_space<vmem>>, vector<8x32xbf16>
    %cst_89 = arith.constant dense<0.000000e+00> : vector<16x32xf32>
    %98 = tpu.matmul %89, %97, %cst_89 {dimension_numbers = #tpu.dot_dimension_numbers<[1], [0], [0], [1], [0, 0, 1, 1], [], []>} : vector<16x8xbf16>, vector<8x32xbf16>, vector<16x32xf32> -> vector<16x32xf32>
    %99 = vector.shape_cast %30 : vector<1x16x32xf32> to vector<16x32xf32>
    %100 = arith.mulf %83, %96 : vector<16x32xf32>
    %101 = arith.addf %99, %100 : vector<16x32xf32>
    %102 = arith.addf %101, %98 : vector<16x32xf32>
    %cst_90 = arith.constant 0.000000e+00 : f32
    %103 = vector.broadcast %cst_90 : f32 to vector<16x32xf32>
    %104 = arith.maximumf %102, %103 : vector<16x32xf32>
    %105 = vector.shape_cast %104 : vector<16x32xf32> to vector<1x16x32xf32>
    %106 = vector.shape_cast %105 : vector<1x16x32xf32> to vector<16x32xf32>
    %107 = arith.truncf %106 : vector<16x32xf32> to vector<16x32xbf16>
    %c0_91 = arith.constant 0 : index
    %c0_92 = arith.constant 0 : index
    %108 = vector.load %arg14[%c0_91, %c0_92] : memref<32x128xbf16, #tpu.memory_space<vmem>>, vector<32x128xbf16>
    %cst_93 = arith.constant dense<0.000000e+00> : vector<16x128xf32>
    %109 = tpu.matmul %107, %108, %cst_93 {dimension_numbers = #tpu.dot_dimension_numbers<[1], [0], [0], [1], [0, 0, 1, 1], [], []>} : vector<16x32xbf16>, vector<32x128xbf16>, vector<16x128xf32> -> vector<16x128xf32>
    %c0_94 = arith.constant 0 : index
    %c0_95 = arith.constant 0 : index
    %110 = vector.load %arg15[%c0_94, %c0_95] : memref<1x128xf32, #tpu.memory_space<vmem>>, vector<1x128xf32>
    %111 = vector.broadcast %110 : vector<1x128xf32> to vector<16x128xf32>
    %112 = arith.mulf %109, %111 : vector<16x128xf32>
    %c0_96 = arith.constant 0 : index
    %c0_97 = arith.constant 0 : index
    %113 = vector.load %arg16[%c0_96, %c0_97] : memref<1x128xf32, #tpu.memory_space<vmem>>, vector<1x128xf32>
    %114 = vector.broadcast %113 : vector<1x128xf32> to vector<16x128xf32>
    %115 = arith.addf %112, %114 : vector<16x128xf32>
    %cst_98 = arith.constant 0.000000e+00 : f32
    %116 = vector.broadcast %cst_98 : f32 to vector<16x128xf32>
    %117 = arith.maximumf %115, %116 : vector<16x128xf32>
    %118 = vector.shape_cast %117 : vector<16x128xf32> to vector<1x16x128xf32>
    %cst_99 = arith.constant dense<0.000000e+00> : vector<1x128xf32>
    %119 = vector.multi_reduction <add>, %118, %cst_99 [1] : vector<1x16x128xf32> to vector<1x128xf32>
    %cst_100 = arith.constant 1.600000e+01 : f32
    %120 = vector.broadcast %cst_100 : f32 to vector<1x128xf32>
    %121 = arith.divf %119, %120 : vector<1x128xf32>
    %c0_101 = arith.constant 0 : index
    %c0_102 = arith.constant 0 : index
    %122 = vector.load %arg17[%c0_101, %c0_102] : memref<128x4xf32, #tpu.memory_space<vmem>>, vector<128x4xf32>
    %cst_103 = arith.constant dense<0.000000e+00> : vector<1x4xf32>
    %123 = tpu.matmul %121, %122, %cst_103 {dimension_numbers = #tpu.dot_dimension_numbers<[1], [0], [0], [1], [0, 0, 1, 1], [], []>} : vector<1x128xf32>, vector<128x4xf32>, vector<1x4xf32> -> vector<1x4xf32>
    %c0_104 = arith.constant 0 : index
    %c0_105 = arith.constant 0 : index
    %124 = vector.load %arg18[%c0_104, %c0_105] : memref<1x4xf32, #tpu.memory_space<vmem>>, vector<1x4xf32>
    %125 = arith.addf %123, %124 : vector<1x4xf32>
    %cst_106 = arith.constant dense<0xFF800000> : vector<1xf32>
    %126 = vector.multi_reduction <maximumf>, %125, %cst_106 [1] : vector<1x4xf32> to vector<1xf32>
    %127 = vector.shape_cast %126 : vector<1xf32> to vector<1x1xf32>
    %128 = vector.broadcast %127 : vector<1x1xf32> to vector<1x4xf32>
    %129 = arith.subf %125, %128 : vector<1x4xf32>
    %130 = math.exp %129 : vector<1x4xf32>
    %cst_107 = arith.constant dense<0.000000e+00> : vector<1xf32>
    %131 = vector.multi_reduction <add>, %130, %cst_107 [1] : vector<1x4xf32> to vector<1xf32>
    %132 = vector.shape_cast %131 : vector<1xf32> to vector<1x1xf32>
    %133 = math.log %132 : vector<1x1xf32>
    %134 = vector.broadcast %133 : vector<1x1xf32> to vector<1x4xf32>
    %135 = arith.subf %129, %134 : vector<1x4xf32>
    %136 = vector.shape_cast %135 : vector<1x4xf32> to vector<1x1x4xf32>
    %c0_108 = arith.constant 0 : index
    %c0_109 = arith.constant 0 : index
    %c0_110 = arith.constant 0 : index
    %137 = vector.load %arg19[%c0_108, %c0_109, %c0_110] : memref<1x1x4xf32, #tpu.memory_space<vmem>>, vector<1x1x4xf32>
    tpu.vector_store %arg19[%c0_108, %c0_109, %c0_110], %136 {strides = array<i32>} : memref<1x1x4xf32, #tpu.memory_space<vmem>>, vector<1x1x4xf32>,
    return
  }
  func.func @transform_0(%arg0: i32) -> (i32, i32, i32) {
    %c0_i32 = arith.constant 0 : i32
    %c0_i32_0 = arith.constant 0 : i32
    %c0_i32_1 = arith.constant 0 : i32
    return %arg0, %c0_i32, %c0_i32_0 : i32, i32, i32
  }
  func.func @transform_1(%arg0: i32) -> (i32, i32, i32) {
    %c0_i32 = arith.constant 0 : i32
    %c0_i32_0 = arith.constant 0 : i32
    %c0_i32_1 = arith.constant 0 : i32
    %c0_i32_2 = arith.constant 0 : i32
    return %c0_i32, %c0_i32_0, %c0_i32_1 : i32, i32, i32
  }
  func.func @transform_2(%arg0: i32) -> (i32, i32) {
    %c0_i32 = arith.constant 0 : i32
    %c0_i32_0 = arith.constant 0 : i32
    %c0_i32_1 = arith.constant 0 : i32
    return %c0_i32, %c0_i32_0 : i32, i32
  }
  func.func @transform_3(%arg0: i32) -> (i32, i32) {
    %c0_i32 = arith.constant 0 : i32
    %c0_i32_0 = arith.constant 0 : i32
    %c0_i32_1 = arith.constant 0 : i32
    return %c0_i32, %c0_i32_0 : i32, i32
  }
  func.func @transform_4(%arg0: i32) -> (i32, i32, i32) {
    %c0_i32 = arith.constant 0 : i32
    %c0_i32_0 = arith.constant 0 : i32
    %c0_i32_1 = arith.constant 0 : i32
    %c0_i32_2 = arith.constant 0 : i32
    return %c0_i32, %c0_i32_0, %c0_i32_1 : i32, i32, i32
  }
  func.func @transform_5(%arg0: i32) -> (i32, i32) {
    %c0_i32 = arith.constant 0 : i32
    %c0_i32_0 = arith.constant 0 : i32
    %c0_i32_1 = arith.constant 0 : i32
    return %c0_i32, %c0_i32_0 : i32, i32
  }
  func.func @transform_6(%arg0: i32) -> (i32, i32) {
    %c0_i32 = arith.constant 0 : i32
    %c0_i32_0 = arith.constant 0 : i32
    %c0_i32_1 = arith.constant 0 : i32
    return %c0_i32, %c0_i32_0 : i32, i32
  }
  func.func @transform_7(%arg0: i32) -> (i32, i32, i32) {
    %c0_i32 = arith.constant 0 : i32
    %c0_i32_0 = arith.constant 0 : i32
    %c0_i32_1 = arith.constant 0 : i32
    %c0_i32_2 = arith.constant 0 : i32
    return %c0_i32, %c0_i32_0, %c0_i32_1 : i32, i32, i32
  }
  func.func @transform_8(%arg0: i32) -> (i32, i32) {
    %c0_i32 = arith.constant 0 : i32
    %c0_i32_0 = arith.constant 0 : i32
    %c0_i32_1 = arith.constant 0 : i32
    return %c0_i32, %c0_i32_0 : i32, i32
  }
  func.func @transform_9(%arg0: i32) -> (i32, i32) {
    %c0_i32 = arith.constant 0 : i32
    %c0_i32_0 = arith.constant 0 : i32
    %c0_i32_1 = arith.constant 0 : i32
    return %c0_i32, %c0_i32_0 : i32, i32
  }
  func.func @transform_10(%arg0: i32) -> (i32, i32) {
    %c0_i32 = arith.constant 0 : i32
    %c0_i32_0 = arith.constant 0 : i32
    %c0_i32_1 = arith.constant 0 : i32
    return %c0_i32, %c0_i32_0 : i32, i32
  }
  func.func @transform_11(%arg0: i32) -> (i32, i32) {
    %c0_i32 = arith.constant 0 : i32
    %c0_i32_0 = arith.constant 0 : i32
    %c0_i32_1 = arith.constant 0 : i32
    return %c0_i32, %c0_i32_0 : i32, i32
  }
  func.func @transform_12(%arg0: i32) -> (i32, i32) {
    %c0_i32 = arith.constant 0 : i32
    %c0_i32_0 = arith.constant 0 : i32
    %c0_i32_1 = arith.constant 0 : i32
    return %c0_i32, %c0_i32_0 : i32, i32
  }
  func.func @transform_13(%arg0: i32) -> (i32, i32) {
    %c0_i32 = arith.constant 0 : i32
    %c0_i32_0 = arith.constant 0 : i32
    %c0_i32_1 = arith.constant 0 : i32
    return %c0_i32, %c0_i32_0 : i32, i32
  }
  func.func @transform_14(%arg0: i32) -> (i32, i32) {
    %c0_i32 = arith.constant 0 : i32
    %c0_i32_0 = arith.constant 0 : i32
    %c0_i32_1 = arith.constant 0 : i32
    return %c0_i32, %c0_i32_0 : i32, i32
  }
  func.func @transform_15(%arg0: i32) -> (i32, i32) {
    %c0_i32 = arith.constant 0 : i32
    %c0_i32_0 = arith.constant 0 : i32
    %c0_i32_1 = arith.constant 0 : i32
    return %c0_i32, %c0_i32_0 : i32, i32
  }
  func.func @transform_16(%arg0: i32) -> (i32, i32) {
    %c0_i32 = arith.constant 0 : i32
    %c0_i32_0 = arith.constant 0 : i32
    %c0_i32_1 = arith.constant 0 : i32
    return %c0_i32, %c0_i32_0 : i32, i32
  }
  func.func @transform_17(%arg0: i32) -> (i32, i32) {
    %c0_i32 = arith.constant 0 : i32
    %c0_i32_0 = arith.constant 0 : i32
    %c0_i32_1 = arith.constant 0 : i32
    return %c0_i32, %c0_i32_0 : i32, i32
  }
  func.func @transform_18(%arg0: i32) -> (i32, i32, i32) {
    %c0_i32 = arith.constant 0 : i32
    %c0_i32_0 = arith.constant 0 : i32
    %c0_i32_1 = arith.constant 0 : i32
    return %arg0, %c0_i32, %c0_i32_0 : i32, i32, i32
  }
}

</mosaic_0001>

<bundles_post_ra>
// kernel: _lambda_.1
= control target key start
LH: loop header
LB: loop body
LE: loop exit
PB: predicated region body
PF: predicated region fallthrough
CT: control target
= control target key end

     0   :  { %s3672_s0 = inlined_call_operand.vmem [shape: f32[2,16,4], index: 0, kind: input, shape index: {}]   ;;  %s3673_s1 = inlined_call_operand.hbm [shape: bf16[3,4,32], index: 1, kind: input, shape index: {}]   ;;  %s3674_s2 = inlined_call_operand.hbm [shape: f32[1,32], index: 2, kind: input, shape index: {}]   ;;  %s3675_s3 = inlined_call_operand.hbm [shape: f32[1,32], index: 3, kind: input, shape index: {}]   ;;  %s3676_s4 = inlined_call_operand.vmem [shape: bf16[3,32,32], index: 4, kind: input, shape index: {}]   ;;  %s3677_s5 = inlined_call_operand.hbm [shape: f32[1,32], index: 5, kind: input, shape index: {}]   ;;  %s3678_s6 = inlined_call_operand.hbm [shape: f32[1,32], index: 6, kind: input, shape index: {}]   ;;  %s3679_s7 = inlined_call_operand.vmem [shape: bf16[3,32,32], index: 7, kind: input, shape index: {}]   ;;  %s3680_s8 = inlined_call_operand.hbm [shape: f32[1,32], index: 8, kind: input, shape index: {}]   ;;  %s3681_s9 = inlined_call_operand.hbm [shape: f32[1,32], index: 9, kind: input, shape index: {}]   ;;  %s3682_s10 = inlined_call_operand.vmem [shape: bf16[32,8], index: 10, kind: input, shape index: {}]   ;;  %s3683_s11 = inlined_call_operand.hbm [shape: bf16[8,32], index: 11, kind: input, shape index: {}]   ;;  %s3684_s12 = inlined_call_operand.hbm [shape: bf16[8,32], index: 12, kind: input, shape index: {}]   ;;  %s3685_s13 = inlined_call_operand.hbm [shape: bf16[32,128], index: 13, kind: input, shape index: {}]   ;;  %s3686_s14 = inlined_call_operand.hbm [shape: f32[1,128], index: 14, kind: input, shape index: {}]   ;;  %s3687_s15 = inlined_call_operand.hbm [shape: f32[1,128], index: 15, kind: input, shape index: {}]   ;;  %s3688_s16 = inlined_call_operand.hbm [shape: f32[128,4], index: 16, kind: input, shape index: {}]   ;;  %s3689_s17 = inlined_call_operand.vmem [shape: f32[1,4], index: 17, kind: input, shape index: {}]   ;;  %s3690_s18 = inlined_call_operand.hbm [shape: f32[2,1,4], index: 18, kind: output, shape index: {}]  }
   0x1   :  { %3707 = sst [smem:[#allocation41_spill]] %s3672_s0 }
   0x2   :  { %3708 = sst [smem:[#allocation42_spill]] %s3673_s1 }
   0x3   :  { %3709 = sst [smem:[#allocation43_spill]] %s3674_s2 }
   0x4   :  { %3710 = sst [smem:[#allocation44_spill]] %s3677_s5 }
   0x5   :  { %3711 = sst [smem:[#allocation45_spill]] %s3680_s8 }
   0x6   :  { %3712 = sst [smem:[#allocation46_spill]] %s3683_s11 }
   0x7   :  { %3713 = sst [smem:[#allocation47_spill]] %s3685_s13 }
   0x8   :  { %3714 = sst [smem:[#allocation48_spill]] %s3689_s17 }
   0x9   :  { %3715 = sst [smem:[#allocation49_spill]] %s3690_s18 }
   0xa   :  { %23 = vsyncpa [#allocation4], 0 }
   0xb   :  { %24 = vsyncpa [#allocation7], 0 }
   0xc   :  { %25 = vsyncpa [#allocation10], 0 }
   0xd   :  { %26 = vsyncpa [#allocation13], 0 }
   0xe   :  { %27 = vsyncpa [#allocation16], 0 }
   0xf   :  { %28 = vsyncpa [#allocation19], 0 }
  0x10   :  { %29 = vsyncpa [#allocation22], 0 }
  0x11   :  { %30 = vsyncpa [#allocation5], 0 }
  0x12   :  { %32 = vsyncpa [#allocation5 + $0x1], 0  ;;  %s3126_s27 = smov 0   ;;  %s3128_s28 = smov 0  }
  0x13   :  { %s3130_s29 = smov 0   ;;  %s3132_s30 = smov 0  }
  0x14 LB: > { %3716 = sst [smem:[#allocation33_spill]] %s2993_s27  ;;  %s3147_s0 = sadd.s32 4294967295, %s3005_s30   ;;  %s3005_s30 = sphi %s3132_s30, %s3761_s30   ;;  %s3001_s29 = sphi %s3130_s29, %s3764_s29   ;;  %s2997_s28 = sphi %s3128_s28, %s3763_s28   ;;  %s2993_s27 = sphi %s3126_s27, %s3762_s27  }
  0x15   : > { %3717 = sst [smem:[#allocation34_spill]] %s2997_s28  ;;  %s2026_s19 = sadd.s32 4294967294, %s3005_s30  }
  0x16   : > { %3718 = sst [smem:[#allocation35_spill]] %s3001_s29  ;;  %s3151_s1 = sadd.s32 1, %s3005_s30  }
  0x17   : > { %3719 = sst [smem:[#allocation36_spill]] %s3005_s30  ;;  %s428_s20 = sadd.s32 1, %s3001_s29 }
  0x18   : > { %3720 = sst [smem:[#allocation37_spill]] %s3151_s1  ;;  %s425_s21 = ssub.s32 %s3005_s30, %s3151_s1 }
  0x19   : > { %p438_p0 = scmp.ne.s32.totalorder %s3001_s29, %s2997_s28  ;;  %p426_p1 = scmp.eq.s32.totalorder %s425_s21, 0 }
  0x1a   : > { %p439_p2 = scmp.eq.s32.totalorder %s3147_s0, 1  ;;  %p444_p3 = scmp.ne.s32.totalorder %s2997_s28, %s2993_s27 }
  0x1b   : > { %p445_p4 = scmp.eq.s32.totalorder %s2026_s19, 1  ;;  %p2027_p7 = scmp.ge.s32.totalorder %s3005_s30, 1 }
  0x1c   : > { %s3162_s22 = scalar_select %p426_p1, %s3001_s29, %s428_s20  }
  0x1d   : > { %p3164_p5 = por %p439_p2, %p438_p0  ;;  %p3168_p6 = por %p445_p4, %p444_p3 }
  0x1e   : > { %3721 = sst [smem:[#allocation38_spill]] %s3162_s22  ;;  %p452_p8 = scmp.lt.s32.totalorder %s3005_s30, 3 }
  0x1f   : > { %s3722_s2 = scalar_select %p3164_p5, 1, 0 }
  0x20   : > { %s3724_s23 = scalar_select %p3168_p6, 1, 0 }
  0x21   : > { %3723 = sst [smem:[#allocation39_spill]] %s3722_s2  ;;  %p3702_p9 = scmp.eq.s32.totalorder %s3147_s0, 0 }
  0x22   : > { %3725 = sst [smem:[#allocation40_spill]] %s3724_s23  ;;  %p3175_p10 = pnand %p2027_p7, %p452_p8 }
  0x23   : > { %s3007_s25 = smov [#allocation6]   ;;  %s3008_s19 = smov [#allocation9]  }
  0x24   : > { %s3726_s24 = scalar_select %p3175_p10, 1, 0 }
  0x25   : > { %s478_s26 = sshll.u32 %s3007_s25, 4  ;;  %p2397_p11 = pneg %p3175_p10  ;;  %s479_s26 = int_to_ptr.vmem [resolvable:$true] %s478_s26 }
  0x26   : > { %s503_s20 = sshll.u32 %s3008_s19, 4  ;;  %s3009_s22 = smov [#allocation12]   ;;  %s3187_s20 = int_to_ptr.vmem [resolvable:$true] %s503_s20 }
  0x27   : > { %p3183_p12 = pnand %p3702_p9, %p2397_p11  ;;  %s528_s29 = sshll.u32 %s3009_s22, 4  ;;  %s3189_s29 = int_to_ptr.vmem [resolvable:$true] %s528_s29 }
  0x28   : > { %s3728_s25 = sld [smem:[#allocation43_spill]] }
  0x29   : > { %p3199_p0 = pneg %p3183_p12 }
  0x2e   : > { %s2551_s27 = scalar_lea.hbm %s3728_s25, 16 }
  0x2f   : > { %p2552_p13 = scmp.ne.s32.totalorder %s3728_s25, %s2551_s27  ;;  %p2558_p3 = scmp.lt.u32.totalorder %s2551_s27, %s3728_s25 }
  0x31   : > { %p2554_p1 = pnand %p3199_p0, %p2552_p13 }
  0x33   : > { %p2555_p2 = pneg %p2554_p1 }
  0x35   : > { %p2560_p4 = pnand %p2558_p3, %p2555_p2 }
  0x37   : > { %2563 = shalt.err (!%p2560_p4)
}
  0x38   : > { %s2564_s1 = scalar_lea.vmem %s479_s26, 16  ;;  %s2571_s18 = scalar_lea.vmem %s479_s26, 32 }
  0x39   : > { %p2565_p7 = scmp.ne.s32.totalorder %s479_s26, %s2564_s1  ;;  %p2572_p9 = scmp.lt.s32.totalorder %s479_s26, %s479_s26 }
  0x3a   : > { %p2573_p6 = scmp.lt.s32.totalorder %s2571_s18, %s2564_s1 }
  0x3b   : > { %p2567_p8 = pnand %p2565_p7, %p3199_p0 }
  0x3c   : > { %p2574_p5 = por %p2573_p6, %p2572_p9 }
  0x3d   : > { %p2568_p11 = pneg %p2567_p8 }
  0x3f   : > { %p2575_p10 = pnand %p2574_p5, %p2568_p11 }
  0x41   : > { %2578 = shalt.err (!%p2575_p10)
}
  0x42   : > { %2403 = dma.hbm_to_vmem [thread:$0]  (!%p3183_p12), %s3728_s25, 16, %s479_s26, [#allocation7]  }
  0x43   : > { %s3730_s5 = sld [smem:[#allocation44_spill]] }
  0x49   : > { %s2579_s22 = scalar_lea.hbm %s3730_s5, 16 }
  0x4a   : > { %p2580_p13 = scmp.ne.s32.totalorder %s3730_s5, %s2579_s22  ;;  %p2586_p5 = scmp.lt.u32.totalorder %s2579_s22, %s3730_s5 }
  0x4c   : > { %p2582_p1 = pnand %p2580_p13, %p3199_p0 }
  0x4e   : > { %p2583_p6 = pneg %p2582_p1 }
  0x50   : > { %p2588_p9 = pnand %p2586_p5, %p2583_p6 }
  0x52   : > { %2591 = shalt.err (!%p2588_p9)
}
  0x53   : > { %s2592_s26 = scalar_lea.vmem %s3187_s20, 16  ;;  %s2599_s17 = scalar_lea.vmem %s3187_s20, 32 }
  0x54   : > { %p2593_p10 = scmp.ne.s32.totalorder %s3187_s20, %s2592_s26  ;;  %p2600_p4 = scmp.lt.s32.totalorder %s3187_s20, %s3187_s20 }
  0x55   : > { %p2601_p7 = scmp.lt.s32.totalorder %s2599_s17, %s2592_s26 }
  0x56   : > { %p2595_p2 = pnand %p2593_p10, %p3199_p0 }
  0x57   : > { %p2602_p8 = por %p2601_p7, %p2600_p4 }
  0x58   : > { %p2596_p3 = pneg %p2595_p2 }
  0x5a   : > { %p2603_p11 = pnand %p2602_p8, %p2596_p3 }
  0x5c   : > { %2606 = shalt.err (!%p2603_p11)
}
  0x5d   : > { %2409 = dma.hbm_to_vmem [thread:$0]  (!%p3183_p12), %s3730_s5, 16, %s3187_s20, [#allocation10]  }
  0x5e   : > { %s3731_s8 = sld [smem:[#allocation45_spill]] }
  0x64   : > { %s2607_s2 = scalar_lea.hbm %s3731_s8, 16 }
  0x65   : > { %p2608_p13 = scmp.ne.s32.totalorder %s3731_s8, %s2607_s2  ;;  %p2614_p5 = scmp.lt.u32.totalorder %s2607_s2, %s3731_s8 }
  0x67   : > { %p2610_p1 = pnand %p2608_p13, %p3199_p0 }
  0x69   : > { %p2611_p6 = pneg %p2610_p1 }
  0x6b   : > { %p2616_p9 = pnand %p2614_p5, %p2611_p6 }
  0x6d   : > { %2619 = shalt.err (!%p2616_p9)
}
  0x6e   : > { %s2620_s20 = scalar_lea.vmem %s3189_s29, 16  ;;  %s2627_s17 = scalar_lea.vmem %s3189_s29, 32 }
  0x6f   : > { %p2621_p10 = scmp.ne.s32.totalorder %s3189_s29, %s2620_s20  ;;  %p2628_p4 = scmp.lt.s32.totalorder %s3189_s29, %s3189_s29 }
  0x70   : > { %p2629_p7 = scmp.lt.s32.totalorder %s2627_s17, %s2620_s20 }
  0x71   : > { %p2623_p2 = pnand %p2621_p10, %p3199_p0 }
  0x72   : > { %p2630_p8 = por %p2629_p7, %p2628_p4 }
  0x73   : > { %p2624_p3 = pneg %p2623_p2 }
  0x75   : > { %p2631_p11 = pnand %p2630_p8, %p2624_p3 }
  0x77   : > { %2634 = shalt.err (!%p2631_p11)
}
  0x78   : > { %2415 = dma.hbm_to_vmem [thread:$0]  (!%p3183_p12), %s3731_s8, 16, %s3189_s29, [#allocation13]  }
  0x79   : > { %s3010_s23 = smov [#allocation15]   ;;  %s3011_s2 = smov [#allocation18]  }
  0x7a   : > { %s553_s27 = sshll.u32 %s3010_s23, 4  ;;  %s574_s22 = sshll.u32 %s3011_s2, 4  ;;  %s554_s27 = int_to_ptr.vmem [resolvable:$true] %s553_s27  ;;  %s575_s22 = int_to_ptr.vmem [resolvable:$true] %s574_s22 }
  0x7b   : > { %s3732_s11 = sld [smem:[#allocation46_spill]] }
  0x81   : > { %s2635_s26 = scalar_lea.hbm %s3732_s11, 64 }
  0x82   : > { %p2636_p13 = scmp.ne.s32.totalorder %s3732_s11, %s2635_s26  ;;  %p2642_p5 = scmp.lt.u32.totalorder %s2635_s26, %s3732_s11 }
  0x84   : > { %p2638_p1 = pnand %p2636_p13, %p3199_p0 }
  0x86   : > { %p2639_p6 = pneg %p2638_p1 }
  0x88   : > { %p2644_p9 = pnand %p2642_p5, %p2639_p6 }
  0x8a   : > { %2647 = shalt.err (!%p2644_p9)
}
  0x8b   : > { %s2648_s29 = scalar_lea.vmem %s554_s27, 64  ;;  %p2656_p4 = scmp.lt.s32.totalorder %s554_s27, %s554_s27 }
  0x8c   : > { %p2649_p10 = scmp.ne.s32.totalorder %s554_s27, %s2648_s29  ;;  %p2657_p7 = scmp.lt.s32.totalorder %s2648_s29, %s2648_s29 }
  0x8e   : > { %p2651_p2 = pnand %p2649_p10, %p3199_p0  ;;  %p2658_p8 = por %p2657_p7, %p2656_p4 }
  0x90   : > { %p2652_p3 = pneg %p2651_p2 }
  0x92   : > { %p2659_p11 = pnand %p2658_p8, %p2652_p3 }
  0x94   : > { %2662 = shalt.err (!%p2659_p11)
}
  0x95   : > { %2421 = dma.hbm_to_vmem [thread:$0]  (!%p3183_p12), %s3732_s11, 64, %s554_s27, [#allocation16]  }
  0x96   : > { %s3733_s13 = sld [smem:[#allocation47_spill]] }
  0x9c   : > { %s2663_s1 = scalar_lea.hbm %s3733_s13, 256 }
  0x9d   : > { %p2664_p13 = scmp.ne.s32.totalorder %s3733_s13, %s2663_s1  ;;  %p2670_p5 = scmp.lt.u32.totalorder %s2663_s1, %s3733_s13 }
  0x9f   : > { %p2666_p1 = pnand %p2664_p13, %p3199_p0 }
  0xa1   : > { %p2667_p6 = pneg %p2666_p1 }
  0xa3   : > { %p2672_p9 = pnand %p2670_p5, %p2667_p6 }
  0xa5   : > { %2675 = shalt.err (!%p2672_p9)
}
  0xa6   : > { %s2676_s28 = scalar_lea.vmem %s575_s22, 256  ;;  %p2684_p4 = scmp.lt.s32.totalorder %s575_s22, %s575_s22 }
  0xa7   : > { %p2677_p10 = scmp.ne.s32.totalorder %s575_s22, %s2676_s28  ;;  %p2685_p7 = scmp.lt.s32.totalorder %s2676_s28, %s2676_s28 }
  0xa9   : > { %p2679_p2 = pnand %p2677_p10, %p3199_p0  ;;  %p2686_p8 = por %p2685_p7, %p2684_p4 }
  0xab   : > { %p2680_p3 = pneg %p2679_p2 }
  0xad   : > { %p2687_p11 = pnand %p2686_p8, %p2680_p3 }
  0xaf   : > { %2690 = shalt.err (!%p2687_p11)
}
  0xb0   : > { %s3012_s27 = smov 64   ;;  %s3013_s29 = smov 4  }
  0xb1   : > { %2427 = dma.hbm_to_vmem [thread:$0]  (!%p3183_p12), %s3733_s13, 256, %s575_s22, [#allocation19], %s3012_s27, %s3012_s27, %s3013_s29  }
  0xb2   : > { %s3014_s5 = smov [#allocation21]   ;;  %s3015_s1 = smov [#allocation3]  }
  0xb3   : > { %s599_s2 = sshll.u32 %s3014_s5, 4  ;;  %s464_s18 = sshll.u32 %s3015_s1, 4  ;;  %s600_s2 = int_to_ptr.vmem [resolvable:$true] %s599_s2  ;;  %s465_s18 = int_to_ptr.vmem [resolvable:$true] %s464_s18 }
  0xb4   : > { %s2691_s17 = scalar_lea.hbm %s3687_s15, 16 }
  0xb5   : > { %p2692_p13 = scmp.ne.s32.totalorder %s3687_s15, %s2691_s17  ;;  %p2698_p5 = scmp.lt.u32.totalorder %s2691_s17, %s3687_s15 }
  0xb7   : > { %p2694_p1 = pnand %p2692_p13, %p3199_p0 }
  0xb9   : > { %p2695_p6 = pneg %p2694_p1 }
  0xbb   : > { %p2700_p9 = pnand %p2698_p5, %p2695_p6 }
  0xbd   : > { %2703 = shalt.err (!%p2700_p9)
}
  0xbe   : > { %s2704_s22 = scalar_lea.vmem %s600_s2, 16  ;;  %s2711_s27 = scalar_lea.vmem %s600_s2, 32 }
  0xbf   : > { %p2705_p10 = scmp.ne.s32.totalorder %s600_s2, %s2704_s22  ;;  %p2712_p4 = scmp.lt.s32.totalorder %s600_s2, %s600_s2 }
  0xc0   : > { %p2713_p7 = scmp.lt.s32.totalorder %s2711_s27, %s2704_s22 }
  0xc1   : > { %p2707_p2 = pnand %p2705_p10, %p3199_p0 }
  0xc2   : > { %p2714_p8 = por %p2713_p7, %p2712_p4 }
  0xc3   : > { %p2708_p3 = pneg %p2707_p2 }
  0xc5   : > { %p2715_p11 = pnand %p2714_p8, %p2708_p3 }
  0xc7   : > { %2718 = shalt.err (!%p2715_p11)
}
  0xc8   : > { %2433 = dma.hbm_to_vmem [thread:$0]  (!%p3183_p12), %s3687_s15, 16, %s600_s2, [#allocation22]  }
  0xc9   : > { %s3734_s30 = sld [smem:[#allocation42_spill]] }
  0xcf   : > { %s3735_s23 = smov %s3734_s30  ;;  %s2719_s5 = scalar_lea.hbm %s3734_s30, 96 }
  0xd0   : > { %p2720_p13 = scmp.ne.s32.totalorder %s3735_s23, %s2719_s5  ;;  %p2726_p5 = scmp.lt.u32.totalorder %s2719_s5, %s3735_s23 }
  0xd2   : > { %p2722_p1 = pnand %p2720_p13, %p3199_p0 }
  0xd4   : > { %p2723_p6 = pneg %p2722_p1 }
  0xd6   : > { %p2728_p9 = pnand %p2726_p5, %p2723_p6 }
  0xd8   : > { %2731 = shalt.err (!%p2728_p9)
}
  0xd9   : > { %s2732_s28 = scalar_lea.vmem %s465_s18, 96  ;;  %p2740_p4 = scmp.lt.s32.totalorder %s465_s18, %s465_s18 }
  0xda   : > { %p2733_p10 = scmp.ne.s32.totalorder %s465_s18, %s2732_s28  ;;  %p2741_p7 = scmp.lt.s32.totalorder %s2732_s28, %s2732_s28 }
  0xdc   : > { %p2735_p2 = pnand %p2733_p10, %p3199_p0  ;;  %p2742_p8 = por %p2741_p7, %p2740_p4 }
  0xde   : > { %p2736_p3 = pneg %p2735_p2 }
  0xe0   : > { %p2743_p11 = pnand %p2742_p8, %p2736_p3 }
  0xe2   : > { %2746 = shalt.err (!%p2743_p11)
}
  0xe3   : > { %s3016_s2 = smov 32   ;;  %s3017_s22 = smov 2  }
  0xe4   : > { %2400 = dma.hbm_to_vmem [thread:$0]  (!%p3183_p12), %s3735_s23, 96, %s465_s18, [#allocation4], %s3016_s2, %s3016_s2, %s3017_s22  }
  0xe5   : > { %s3018_s29 = smov [#allocation8]   ;;  %s3019_s25 = smov [#allocation11]  }
  0xe6   : > { %s489_s11 = sshll.u32 %s3018_s29, 4  ;;  %s514_s30 = sshll.u32 %s3019_s25, 4  ;;  %s490_s11 = int_to_ptr.vmem [resolvable:$true] %s489_s11  ;;  %s515_s30 = int_to_ptr.vmem [resolvable:$true] %s514_s30 }
  0xe7   : > { %s2747_s26 = scalar_lea.hbm %s3675_s3, 16 }
  0xe8   : > { %p2748_p13 = scmp.ne.s32.totalorder %s3675_s3, %s2747_s26  ;;  %p2754_p5 = scmp.lt.u32.totalorder %s2747_s26, %s3675_s3 }
  0xea   : > { %p2750_p1 = pnand %p2748_p13, %p3199_p0 }
  0xec   : > { %p2751_p6 = pneg %p2750_p1 }
  0xee   : > { %p2756_p9 = pnand %p2754_p5, %p2751_p6 }
  0xf0   : > { %2759 = shalt.err (!%p2756_p9)
}
  0xf1   : > { %s2760_s18 = scalar_lea.vmem %s490_s11, 16  ;;  %s2767_s2 = scalar_lea.vmem %s490_s11, 32 }
  0xf2   : > { %p2761_p10 = scmp.ne.s32.totalorder %s490_s11, %s2760_s18  ;;  %p2768_p4 = scmp.lt.s32.totalorder %s490_s11, %s490_s11 }
  0xf3   : > { %p2769_p7 = scmp.lt.s32.totalorder %s2767_s2, %s2760_s18 }
  0xf4   : > { %p2763_p2 = pnand %p2761_p10, %p3199_p0 }
  0xf5   : > { %p2770_p8 = por %p2769_p7, %p2768_p4 }
  0xf6   : > { %p2764_p3 = pneg %p2763_p2 }
  0xf8   : > { %p2771_p11 = pnand %p2770_p8, %p2764_p3 }
  0xfa   : > { %2774 = shalt.err (!%p2771_p11)
}
  0xfb   : > { %2406 = dma.hbm_to_vmem [thread:$0]  (!%p3183_p12), %s3675_s3, 16, %s490_s11, [#allocation7]  }
  0xfc   : > { %s2775_s29 = scalar_lea.hbm %s3678_s6, 16 }
  0xfd   : > { %p2776_p13 = scmp.ne.s32.totalorder %s3678_s6, %s2775_s29  ;;  %p2782_p5 = scmp.lt.u32.totalorder %s2775_s29, %s3678_s6 }
  0xff   : > { %p2778_p1 = pnand %p2776_p13, %p3199_p0 }
 0x101   : > { %p2779_p6 = pneg %p2778_p1 }
 0x103   : > { %p2784_p9 = pnand %p2782_p5, %p2779_p6 }
 0x105   : > { %2787 = shalt.err (!%p2784_p9)
}
 0x106   : > { %s2788_s20 = scalar_lea.vmem %s515_s30, 16  ;;  %s2795_s11 = scalar_lea.vmem %s515_s30, 32 }
 0x107   : > { %p2789_p10 = scmp.ne.s32.totalorder %s515_s30, %s2788_s20  ;;  %p2796_p4 = scmp.lt.s32.totalorder %s515_s30, %s515_s30 }
 0x108   : > { %p2797_p7 = scmp.lt.s32.totalorder %s2795_s11, %s2788_s20 }
 0x109   : > { %p2791_p2 = pnand %p2789_p10, %p3199_p0 }
 0x10a   : > { %p2798_p8 = por %p2797_p7, %p2796_p4 }
 0x10b   : > { %p2792_p3 = pneg %p2791_p2 }
 0x10d   : > { %p2799_p11 = pnand %p2798_p8, %p2792_p3 }
 0x10f   : > { %2802 = shalt.err (!%p2799_p11)
}
 0x110   : > { %2412 = dma.hbm_to_vmem [thread:$0]  (!%p3183_p12), %s3678_s6, 16, %s515_s30, [#allocation10]  }
 0x111   : > { %s3020_s18 = smov [#allocation14]   ;;  %s3021_s22 = smov [#allocation17]  }
 0x112   : > { %s539_s2 = sshll.u32 %s3020_s18, 4  ;;  %s564_s27 = sshll.u32 %s3021_s22, 4  ;;  %s540_s2 = int_to_ptr.vmem [resolvable:$true] %s539_s2  ;;  %s565_s27 = int_to_ptr.vmem [resolvable:$true] %s564_s27 }
 0x113   : > { %s2803_s29 = scalar_lea.hbm %s3681_s9, 16 }
 0x114   : > { %p2804_p13 = scmp.ne.s32.totalorder %s3681_s9, %s2803_s29  ;;  %p2810_p5 = scmp.lt.u32.totalorder %s2803_s29, %s3681_s9 }
 0x116   : > { %p2806_p1 = pnand %p2804_p13, %p3199_p0 }
 0x118   : > { %p2807_p6 = pneg %p2806_p1 }
 0x11a   : > { %p2812_p9 = pnand %p2810_p5, %p2807_p6 }
 0x11c   : > { %2815 = shalt.err (!%p2812_p9)
}
 0x11d   : > { %s2816_s30 = scalar_lea.vmem %s540_s2, 16  ;;  %s2823_s20 = scalar_lea.vmem %s540_s2, 32 }
 0x11e   : > { %p2817_p10 = scmp.ne.s32.totalorder %s540_s2, %s2816_s30  ;;  %p2824_p4 = scmp.lt.s32.totalorder %s540_s2, %s540_s2 }
 0x11f   : > { %p2825_p7 = scmp.lt.s32.totalorder %s2823_s20, %s2816_s30 }
 0x120   : > { %p2819_p2 = pnand %p2817_p10, %p3199_p0 }
 0x121   : > { %p2826_p8 = por %p2825_p7, %p2824_p4 }
 0x122   : > { %p2820_p3 = pneg %p2819_p2 }
 0x124   : > { %p2827_p11 = pnand %p2826_p8, %p2820_p3 }
 0x126   : > { %2830 = shalt.err (!%p2827_p11)
}
 0x127   : > { %2418 = dma.hbm_to_vmem [thread:$0]  (!%p3183_p12), %s3681_s9, 16, %s540_s2, [#allocation13]  }
 0x128   : > { %s2831_s22 = scalar_lea.hbm %s3684_s12, 64 }
 0x129   : > { %p2832_p13 = scmp.ne.s32.totalorder %s3684_s12, %s2831_s22  ;;  %p2838_p5 = scmp.lt.u32.totalorder %s2831_s22, %s3684_s12 }
 0x12b   : > { %p2834_p1 = pnand %p2832_p13, %p3199_p0 }
 0x12d   : > { %p2835_p6 = pneg %p2834_p1 }
 0x12f   : > { %p2840_p9 = pnand %p2838_p5, %p2835_p6 }
 0x131   : > { %2843 = shalt.err (!%p2840_p9)
}
 0x132   : > { %s2844_s5 = scalar_lea.vmem %s565_s27, 64  ;;  %p2852_p4 = scmp.lt.s32.totalorder %s565_s27, %s565_s27 }
 0x133   : > { %p2845_p10 = scmp.ne.s32.totalorder %s565_s27, %s2844_s5  ;;  %p2853_p7 = scmp.lt.s32.totalorder %s2844_s5, %s2844_s5 }
 0x135   : > { %p2847_p2 = pnand %p2845_p10, %p3199_p0  ;;  %p2854_p8 = por %p2853_p7, %p2852_p4 }
 0x137   : > { %p2848_p3 = pneg %p2847_p2 }
 0x139   : > { %p2855_p11 = pnand %p2854_p8, %p2848_p3 }
 0x13b   : > { %2858 = shalt.err (!%p2855_p11)
}
 0x13c   : > { %2424 = dma.hbm_to_vmem [thread:$0]  (!%p3183_p12), %s3684_s12, 64, %s565_s27, [#allocation16]  }
 0x13d   : > { %s3022_s26 = smov [#allocation20]   ;;  %s3023_s20 = smov [#allocation23]  }
 0x13e   : > { %s588_s30 = sshll.u32 %s3022_s26, 4  ;;  %s609_s11 = sshll.u32 %s3023_s20, 4  ;;  %s589_s30 = int_to_ptr.vmem [resolvable:$true] %s588_s30  ;;  %s610_s11 = int_to_ptr.vmem [resolvable:$true] %s609_s11 }
 0x13f   : > { %s2859_s18 = scalar_lea.hbm %s3686_s14, 16 }
 0x140   : > { %p2860_p13 = scmp.ne.s32.totalorder %s3686_s14, %s2859_s18  ;;  %p2866_p5 = scmp.lt.u32.totalorder %s2859_s18, %s3686_s14 }
 0x142   : > { %p2862_p1 = pnand %p2860_p13, %p3199_p0 }
 0x144   : > { %p2863_p6 = pneg %p2862_p1 }
 0x146   : > { %p2868_p9 = pnand %p2866_p5, %p2863_p6 }
 0x148   : > { %2871 = shalt.err (!%p2868_p9)
}
 0x149   : > { %s2872_s27 = scalar_lea.vmem %s589_s30, 16  ;;  %s2879_s25 = scalar_lea.vmem %s589_s30, 32 }
 0x14a   : > { %p2873_p10 = scmp.ne.s32.totalorder %s589_s30, %s2872_s27  ;;  %p2880_p4 = scmp.lt.s32.totalorder %s589_s30, %s589_s30 }
 0x14b   : > { %p2881_p7 = scmp.lt.s32.totalorder %s2879_s25, %s2872_s27 }
 0x14c   : > { %p2875_p2 = pnand %p2873_p10, %p3199_p0 }
 0x14d   : > { %p2882_p8 = por %p2881_p7, %p2880_p4 }
 0x14e   : > { %p2876_p3 = pneg %p2875_p2 }
 0x150   : > { %p2883_p11 = pnand %p2882_p8, %p2876_p3 }
 0x152   : > { %2886 = shalt.err (!%p2883_p11)
}
 0x153   : > { %2430 = dma.hbm_to_vmem [thread:$0]  (!%p3183_p12), %s3686_s14, 16, %s589_s30, [#allocation19]  }
 0x154   : > { %s2887_s20 = scalar_lea.hbm %s3688_s16, 2048 }
 0x155   : > { %p2888_p13 = scmp.ne.s32.totalorder %s3688_s16, %s2887_s20  ;;  %p2894_p5 = scmp.lt.u32.totalorder %s2887_s20, %s3688_s16 }
 0x157   : > { %p2890_p1 = pnand %p2888_p13, %p3199_p0 }
 0x159   : > { %p2891_p6 = pneg %p2890_p1 }
 0x15b   : > { %p2896_p9 = pnand %p2894_p5, %p2891_p6 }
 0x15d   : > { %2899 = shalt.err (!%p2896_p9)
}
 0x15e   : > { %s2900_s13 = scalar_lea.vmem %s610_s11, 2048  ;;  %p2908_p4 = scmp.lt.s32.totalorder %s610_s11, %s610_s11 }
 0x15f   : > { %p2901_p10 = scmp.ne.s32.totalorder %s610_s11, %s2900_s13  ;;  %p2909_p7 = scmp.lt.s32.totalorder %s2900_s13, %s2900_s13 }
 0x161   : > { %p2903_p2 = pnand %p2901_p10, %p3199_p0  ;;  %p2910_p8 = por %p2909_p7, %p2908_p4 }
 0x163   : > { %p2904_p3 = pneg %p2903_p2 }
 0x165   : > { %p2911_p11 = pnand %p2910_p8, %p2904_p3 }
 0x167   : > { %2914 = shalt.err (!%p2911_p11)
}
 0x168   : > { %s3024_s30 = smov 128   ;;  %s3025_s8 = smov 8  }
 0x169   : > { %2436 = dma.hbm_to_vmem [thread:$0]  (!%p3183_p12), %s3688_s16, 2048, %s610_s11, [#allocation22], %s3024_s30, %s3024_s30, %s3025_s8  }
 0x16a   : > { %p3736_p13 = scmp.ne.s32.totalorder %s3726_s24, 0 }
 0x16b   : > { %p3737_p1 = scmp.eq.s32.totalorder (!%p3736_p13), %s3147_s0, 0 }
 0x16c   : > { %636 = sbr.rel (%p3736_p13) target bundleno = 2406 (0x966), region = 92 }
 0x173   : > { %2960 = dma.done.wait (%p3737_p1), [#allocation4], 96   ;;  %p3738_p0 = pmov %p3737_p1 }
 0x175   : > { %2962 = vsyncadd (%p3738_p0), [#allocation4], 4294967200  ;;  %p3739_p6 = pmov %p3738_p0 }
 0x176   : > { %p3740_p5 = pmov %p3738_p0 }
 0x177   : > { %2964 = dma.done.wait (%p3739_p6), [#allocation7], 32  }
 0x178   : > { %2966 = vsyncadd (%p3740_p5), [#allocation7], 4294967264  ;;  %p3741_p9 = pmov %p3738_p0 }
 0x179   : > { %p3742_p12 = pmov %p3738_p0 }
 0x17a   : > { %2968 = dma.done.wait (%p3741_p9), [#allocation10], 32  }
 0x17b   : > { %2970 = vsyncadd (%p3742_p12), [#allocation10], 4294967264  ;;  %p3743_p10 = pmov %p3738_p0 }
 0x17c   : > { %p3744_p2 = pmov %p3738_p0 }
 0x17d   : > { %2972 = dma.done.wait (%p3743_p10), [#allocation13], 32  }
 0x17e   : > { %2974 = vsyncadd (%p3744_p2), [#allocation13], 4294967264  ;;  %p3745_p3 = pmov %p3738_p0 }
 0x17f   : > { %p3746_p4 = pmov %p3738_p0 }
 0x180   : > { %2976 = dma.done.wait (%p3745_p3), [#allocation16], 128  }
 0x181   : > { %2978 = vsyncadd (%p3746_p4), [#allocation16], 4294967168  ;;  %p3747_p7 = pmov %p3738_p0 }
 0x182   : > { %p3748_p8 = pmov %p3738_p0 }
 0x183   : > { %2980 = dma.done.wait (%p3747_p7), [#allocation19], 272  }
 0x184   : > { %2982 = vsyncadd (%p3748_p8), [#allocation19], 4294967024  ;;  %p3749_p11 = pmov %p3738_p0 }
 0x185   : > { %p3750_p13 = pmov %p3738_p0 }
 0x186   : > { %2984 = dma.done.wait (%p3749_p11), [#allocation22], 2064  }
 0x187   : > { %2986 = vsyncadd (%p3750_p13), [#allocation22], 4294965232  ;;  %p737_p1 = scmp.lt.s32.totalorder %s3147_s0, 1  ;;  %v3026_v0 = vmov 0.0   ;;  %vm3027_vm0 = vmmov 0   ;;  %vm743_vm1 = vcmask 257024  }
 0x188   : > { %2168 = vmatprep.subr.bf16.mxu0 %v3026_v0  ;;  %2170 = vmatprep.mubr.msk.bf16.mxu0 %vm3027_vm0, %v3026_v0  ;;  %vm745_vm2 = vcmask 261124   ;;  %v3028_v1 = vmov 0   ;;  %vm768_vm3 = vcmask 1041408   ;;  %s3751_s25 = sld [smem:[#allocation41_spill]]  ;;  %v763_v2 = vld [vmem:[#allocation3 + $0x2] sm:$0x3] }
 0x189   : > { %s738_s24 = scalar_select %p737_p1, %s3147_s0, 1  ;;  %2194 = vmatprep.subr.bf16.mxu1 %v3026_v0  ;;  %2198 = vmatprep.mubr.msk.bf16.mxu1 %vm3027_vm0, %v3026_v0  ;;  %744 = vst.msk [vmem:[#allocation2] sm:$0xf] %vm743_vm1, %v3028_v1  ;;  %v770_v5 = vsel %vm768_vm3, %v763_v2, 0  ;;  %vm753_vm4 = vcmask 31748   ;;  %vm755_vm5 = vcmask 27648  }
 0x18a   : > { %746 = vst.msk [vmem:[#allocation2 + $0x8] sm:$0xf0] %vm745_vm2, %v3028_v1  ;;  %v761_v7 = vld [vmem:[#allocation3] sm:$0x3]  ;;  %2169 = vmatpush3.bf16.msra.mxu0 %v770_v5  ;;  %vm764_vm6 = vcmask 31744   ;;  %v2524_v39 = vld [vmem:[%s3676_s4 + $0x18] sm:$0xff]  }
 0x18b   : > { %s2116_s21 = sshll.u32 %s738_s24, 4  ;;  %2174 = vmatprep.subr.bf16.mxu0 %v3026_v0  ;;  %v835_v9 = vsel %vm768_vm3, %v761_v7, 0  ;;  %v879_v17 = vld [vmem:[#allocation3 + $0x4] sm:$0x3]  ;;  %vm813_vm7 = vsmask.f32 4352 }
 0x18c   : > { %v902_v29 = vsel %vm768_vm3, %v879_v17, 0  ;;  %vm880_vm8 = vsmask.f32 3328  ;;  %v2523_v38 = vld [vmem:[%s3676_s4 + $0x10] sm:$0xff]   ;;  %v2525_v40 = vld [vmem:[%s3676_s4] sm:$0xff]   ;;  %v2526_v41 = vld [vmem:[%s3676_s4 + $0x8] sm:$0xff]  }
 0x18d   : > { %2195 = vmatpush3.bf16.msra.mxu1 %v2525_v40  ;;  %v2061_v42 = vld [vmem:[#allocation6] ss:$0 sm:$0xff]  ;;  %v2062_v44 = vld [vmem:[#allocation8] ss:$0 sm:$0xff]  ;;  %vm998_vm9 = vcmask 261120   ;;  %v2527_v7 = vld [vmem:[%s3676_s4 + $0x20] sm:$0xff]  }
 0x18e   : > { %s741_s5 = scalar_lea.vmem %s3751_s25, %s2116_s21  ;;  %2196 = vmatprep.subr.bf16.mxu1 %v3026_v0  ;;  %vm1531_vm10 = vcmask 1043456   ;;  %vm1527_vm11 = vcmask 64512   ;;  %s3752_s29 = sld [smem:[#allocation48_spill]]  ;;  %vm1818_vm12 = vcmask 24576  }
 0x18f   : > { %v747_v3 = vld [vmem:[%s741_s5] sm:$0xff]  ;;  %v748_v4 = vld [vmem:[%s741_s5 + $0x8] sm:$0xff]  ;;  %s3753_s27 = sld [smem:[#allocation34_spill]]  ;;  %s3754_s24 = sld [smem:[#allocation39_spill]] }
 0x190   : > { %v749_v6 = vpack.c.bf16 %v748_v4, %v747_v3  ;;  %s2113_s19 = sshll.u32 %s3147_s0, 4  ;;  %s3755_s1 = sld [smem:[#allocation49_spill]] }
 0x191   : > { %2197 = vmatpush3.bf16.msra.mxu1 %v2526_v41  ;;  %v2531_v41 = vld [vmem:[%s3679_s7] sm:$0xff]   ;;  %s3030_s0 = smov [#allocation24]  }
 0x192   : > { %v751_v8 = vrot.slane %v749_v6, 4  ;;  %2171 = vmatmul.mubr.msk.bf16.vlgmr.msra.gmra.mrb[0].mxu0 %vm764_vm6, %v749_v6  ;;  %2202 = vmatprep.subr.bf16.mxu1 %v3026_v0  ;;  %s2919_s28 = sshll.u32 %s3030_s0, 4  ;;  %s2920_s28 = int_to_ptr.vmem [resolvable:$false] %s2919_s28 }
 0x193   : > { %2175 = vmatpush3.bf16.msra.mxu0 %v835_v9  ;;  %2176 = vmatprep.mubr.msk.bf16.mxu0 %vm3027_vm0, %v3026_v0  ;;  %s2921_s18 = scalar_lea.vmem %s2920_s28, 32 }
 0x194   : > { %754 = vst.msk [vmem:[#allocation2] sm:$0xf0] %vm753_vm4, %v751_v8  ;;  %2180 = vmatprep.subr.bf16.mxu0 %v3026_v0 }
 0x195   : > { %756 = vst.msk [vmem:[#allocation2 + $0x8] sm:$0xf] %vm755_vm5, %v751_v8  ;;  %s735_s21 = sand.u32 1, %s3753_s27   ;;  %p3756_p6 = scmp.ne.s32.totalorder %s3754_s24, 0 }
 0x196   : > { %s736_s11 = scalar_lea.vmem [#allocation24], %s735_s21  ;;  %s3629_s26 = scalar_lea.hbm %s3755_s1, %s2113_s19 }
 0x197   : > { %s1845_s25 = sshll.u32 %s736_s11, 4  ;;  %s1833_s20 = scalar_lea.sflag [#allocation5], %s735_s21  ;;  %s3631_s25 = int_to_ptr.vmem [resolvable:$true] %s1845_s25 }
 0x198   : > { %s2915_s17 = scalar_lea.vmem %s3631_s25, 16  ;;  %p2922_p12 = scmp.lt.s32.totalorder %s3631_s25, %s2920_s28 }
 0x199   : > { %p2916_p0 = scmp.ne.s32.totalorder %s3631_s25, %s2915_s17  ;;  %p2923_p10 = scmp.lt.s32.totalorder %s2921_s18, %s2915_s17 }
 0x19b   : > { %v757_v10 = vld [vmem:[#allocation2] sm:$0xf8]  ;;  %p2917_p5 = pnand %p2916_p0, %p3756_p6  ;;  %p2924_p2 = por %p2923_p10, %p2922_p12 }
 0x19c   : > { %v758_v11 = vld [vmem:[#allocation2 + $0x8] sm:$0xf]  ;;  %v815_v12 = vshrl.u32 %v757_v10, 16  ;;  %v818_v13 = vshll.u32 %v757_v10, 16  ;;  %v759_v16 = vld [vmem:[#allocation2] sm:$0xf0] }
 0x19d   : > { %v823_v14 = vshrl.u32 %v758_v11, 16  ;;  %v826_v15 = vshll.u32 %v758_v11, 16  ;;  %v760_v18 = vld [vmem:[#allocation2 + $0x8] sm:$0x1f]  ;;  %v882_v23 = vshrl.u32 %v759_v16, 16  ;;  %v885_v24 = vshll.u32 %v759_v16, 16  ;;  %p2918_p9 = pneg %p2917_p5 }
 0x19e   : > { %v817_v19 = vrot.slane %v815_v12, 3  ;;  %v820_v20 = vrot.slane %v818_v13, 4  ;;  %v890_v27 = vshrl.u32 %v760_v18, 16  ;;  %v893_v28 = vshll.u32 %v760_v18, 16  ;;  %v2528_v13 = vld [vmem:[%s3676_s4 + $0x28] sm:$0xff]  }
 0x19f   : > { %v825_v21 = vrot.slane %v823_v14, 3  ;;  %v828_v22 = vrot.slane %v826_v15, 4  ;;  %v884_v31 = vrot.slane %v882_v23, 4  ;;  %v887_v32 = vrot.slane %v885_v24, 5  ;;  %p2925_p3 = pnand %p2924_p2, %p2918_p9 }
 0x1a0   : > { %v821_v25 = vor.u32 %v820_v20, %v817_v19  ;;  %v892_v33 = vrot.slane %v890_v27, 4  ;;  %v895_v34 = vrot.slane %v893_v28, 5  ;;  %v2080_v28 = vld [vmem:[#allocation9] ss:$0 sm:$0xff] }
 0x1a1   : > { %v829_v26 = vor.u32 %v828_v22, %v825_v21  ;;  %v888_v35 = vor.u32 %v887_v32, %v884_v31  ;;  %v2529_v21 = vld [vmem:[%s3679_s7 + $0x10] sm:$0xff]   ;;  %v2530_v22 = vld [vmem:[%s3679_s7 + $0x18] sm:$0xff]  }
 0x1a2   : > { %v896_v36 = vor.u32 %v895_v34, %v892_v33  ;;  %v2081_v31 = vld [vmem:[#allocation11] ss:$0 sm:$0xff] }
 0x1a3   : > { %v830_v30 = vsel %vm813_vm7, %v821_v25, %v829_v26 }
 0x1a4   : > { %2177 = vmatmul.mubr.msk.bf16.vlgmr.msra.gmra.mrb[0].mxu0 %vm764_vm6, %v830_v30  ;;  %v897_v37 = vsel %vm880_vm8, %v888_v35, %v896_v36 }
 0x1a5   : > { %2181 = vmatpush3.bf16.msra.mxu0 %v902_v29  ;;  %2182 = vmatprep.mubr.msk.bf16.mxu0 %vm3027_vm0, %v3026_v0 }
 0x1a6   : > { %2186 = vmatprep.subr.bf16.mxu0 %v3026_v0 }
 0x1b0   : > { %2183 = vmatmul.mubr.msk.bf16.vlgmr.msra.gmra.mrb[0].mxu0 %vm764_vm6, %v897_v37 }
 0x1b1   : > { %2190 = vmatprep.mubr.msk.bf16.mxu0 %vm3027_vm0, %v3026_v0  ;;  %2187 = vmatpush3.bf16.msra.mxu0 %v2523_v38 }
 0x1b2   : > { %2188 = vmatprep.subr.bf16.mxu0 %v3026_v0 }
 0x1b5   : > { %2189 = vmatpush3.bf16.msra.mxu0 %v2524_v39 }
 0x1b6   : > { %2210 = vmatprep.subr.bf16.mxu0 %v3026_v0 }
 0x283   : > { %v938_v43 = vpop.f32.mrb[0].mxu0 }
 0x284   : > { %v954_v45 = vmul.f32 %v2061_v42, %v938_v43  ;;  %v2184_v46 = vpop.f32.mrb[1].mxu0 }
 0x285   : > { %v941_v47 = vpop.f32.mrb[2].mxu0 }
 0x286   : > { %v3519_v48 = vadd.f32 %v2062_v44, %v954_v45  ;;  %v955_v49 = vmul.f32 %v2061_v42, %v941_v47  ;;  %v2185_v50 = vpop.f32.mrb[3].mxu0 }
 0x288   : > { %v3521_v51 = vadd.f32 %v2062_v44, %v955_v49  ;;  %v965_v52 = vmax.f32 %v3519_v48, 0.0  ;;  %v2532_v44 = vld [vmem:[%s3679_s7 + $0x8] sm:$0xff]   ;;  %v1738_v48 = vld [vmem:[#allocation23 + $0x38] sm:$0xff] }
 0x28a   : > { %v966_v53 = vmax.f32 %v3521_v51, 0.0  ;;  %v1739_v51 = vld [vmem:[#allocation23 + $0x40] sm:$0xff] }
 0x28c   : > { %v967_v54 = vpack.c.bf16 %v966_v53, %v965_v52 }
 0x28e   : > { %v969_v55 = vrot.slane %v967_v54, 4  ;;  %2191 = vmatmul.mubr.msk.bf16.vlgmr.msra.gmra.mrb[4].mxu0 %vm998_vm9, %v967_v54 }
 0x28f   : > { %2214 = vmatprep.mubr.msk.bf16.mxu0 %vm3027_vm0, %v3026_v0  ;;  %2211 = vmatpush3.bf16.msra.mxu0 %v2529_v21 }
 0x290   : > { %971 = vst.msk [vmem:[#allocation2] sm:$0xf0] %vm745_vm2, %v969_v55  ;;  %2212 = vmatprep.subr.bf16.mxu0 %v3026_v0 }
 0x291   : > { %972 = vst.msk [vmem:[#allocation2 + $0x8] sm:$0xf] %vm743_vm1, %v969_v55 }
 0x293   : > { %2213 = vmatpush3.bf16.msra.mxu0 %v2530_v22 }
 0x294   : > { %2218 = vmatprep.subr.bf16.mxu0 %v3026_v0 }
 0x297   : > { %v973_v56 = vld [vmem:[#allocation2] sm:$0xf8] }
 0x298   : > { %v974_v57 = vld [vmem:[#allocation2 + $0x8] sm:$0xf]  ;;  %v1044_v58 = vshrl.u32 %v973_v56, 16  ;;  %v1047_v59 = vshll.u32 %v973_v56, 16  ;;  %v975_v3 = vld [vmem:[#allocation2] sm:$0xf0] }
 0x299   : > { %v1052_v60 = vshrl.u32 %v974_v57, 16  ;;  %v1055_v61 = vshll.u32 %v974_v57, 16  ;;  %v976_v4 = vld [vmem:[#allocation2 + $0x8] sm:$0x1f]  ;;  %v1122_v8 = vshrl.u32 %v975_v3, 16  ;;  %v1125_v10 = vshll.u32 %v975_v3, 16 }
 0x29a   : > { %v1046_v62 = vrot.slane %v1044_v58, 3  ;;  %v1049_v63 = vrot.slane %v1047_v59, 4  ;;  %v1130_v11 = vshrl.u32 %v976_v4, 16  ;;  %v1133_v12 = vshll.u32 %v976_v4, 16 }
 0x29b   : > { %v1054_v1 = vrot.slane %v1052_v60, 3  ;;  %v1057_v2 = vrot.slane %v1055_v61, 4  ;;  %v1124_v14 = vrot.slane %v1122_v8, 4  ;;  %v1127_v15 = vrot.slane %v1125_v10, 5 }
 0x29c   : > { %v1050_v5 = vor.u32 %v1049_v63, %v1046_v62  ;;  %v1132_v16 = vrot.slane %v1130_v11, 4  ;;  %v1135_v17 = vrot.slane %v1133_v12, 5  ;;  %v2533_v63 = vld [vmem:[%s3679_s7 + $0x20] sm:$0xff]  }
 0x29d   : > { %v1058_v6 = vor.u32 %v1057_v2, %v1054_v1  ;;  %v1128_v18 = vor.u32 %v1127_v15, %v1124_v14  ;;  %v2535_v14 = vld [vmem:[%s3682_s10] sm:$0xff]   ;;  %v2536_v15 = vld [vmem:[%s3682_s10 + $0x8] sm:$0xff]  }
 0x29e   : > { %v1136_v19 = vor.u32 %v1135_v17, %v1132_v16  ;;  %v2099_v16 = vld [vmem:[#allocation12] ss:$0 sm:$0xff] }
 0x29f   : > { %v1059_v9 = vsel %vm813_vm7, %v1050_v5, %v1058_v6  ;;  %v2534_v6 = vld [vmem:[%s3679_s7 + $0x28] sm:$0xff]  }
 0x2a0   : > { %2199 = vmatmul.mubr.msk.bf16.vlgmr.msra.gmra.mrb[0].mxu1 %vm998_vm9, %v1059_v9  ;;  %v1137_v20 = vsel %vm880_vm8, %v1128_v18, %v1136_v19 }
 0x2a1   : > { %2203 = vmatpush3.bf16.msra.mxu1 %v2527_v7  ;;  %2206 = vmatprep.mubr.msk.bf16.mxu1 %vm3027_vm0, %v3026_v0 }
 0x2a2   : > { %2204 = vmatprep.subr.bf16.mxu1 %v3026_v0 }
 0x2a5   : > { %2205 = vmatpush3.bf16.msra.mxu1 %v2528_v13 }
 0x2a6   : > { %2234 = vmatprep.subr.bf16.mxu1 %v3026_v0 }
 0x2ac   : > { %2207 = vmatmul.mubr.msk.bf16.vlgmr.msra.gmra.mrb[0].mxu1 %vm998_vm9, %v1137_v20  ;;  %v2100_v20 = vld [vmem:[#allocation14] ss:$0 sm:$0xff] }
 0x2ad   : > { %2238 = vmatprep.mubr.msk.bf16.mxu1 %vm3027_vm0, %v3026_v0  ;;  %2235 = vmatpush3.bf16.msra.mxu1 %v2535_v14 }
 0x2ae   : > { %2236 = vmatprep.subr.bf16.mxu1 %v3026_v0 }
 0x2b1   : > { %2237 = vmatpush3.bf16.msra.mxu1 %v2536_v15  ;;  %v1737_v15 = vld [vmem:[#allocation23 + $0x30] sm:$0xff] }
 0x2b2   : > { %2242 = vmatprep.subr.bf16.mxu1 %v3026_v0 }
 0x361   : > { %v1036_v23 = vpop.f32.mrb[4].mxu0 }
 0x362   : > { %v2192_v24 = vpop.f32.mrb[5].mxu0 }
 0x363   : > { %v1039_v25 = vpop.f32.mrb[6].mxu0  ;;  %v1526_v24 = vld [vmem:[#allocation15] sm:$0xf] }
 0x364   : > { %v2193_v26 = vpop.f32.mrb[7].mxu0 }
 0x37f   : > { %v1187_v27 = vpop.f32.mrb[0].mxu1 }
 0x380   : > { %v2321_v29 = vadd.f32 %v1187_v27, %v1036_v23  ;;  %v2208_v30 = vpop.f32.mrb[1].mxu1 }
 0x381   : > { %v1190_v32 = vpop.f32.mrb[2].mxu1 }
 0x382   : > { %v1203_v33 = vmul.f32 %v2321_v29, %v2080_v28  ;;  %v2322_v34 = vadd.f32 %v1190_v32, %v1039_v25  ;;  %v2209_v35 = vpop.f32.mrb[3].mxu1  ;;  %v1588_v32 = vld [vmem:[#allocation17] sm:$0xf] }
 0x384   : > { %v1212_v36 = vadd.f32 %v2081_v31, %v1203_v33  ;;  %v1204_v37 = vmul.f32 %v2322_v34, %v2080_v28  ;;  %v1533_v28 = vsel %vm1531_vm10, %v1526_v24, 0  ;;  %v1746_v24 = vld [vmem:[#allocation23 + $0x78] sm:$0xff] }
 0x386   : > { %v1213_v38 = vadd.f32 %v2081_v31, %v1204_v37  ;;  %v1214_v39 = vmax.f32 %v1212_v36, 0.0  ;;  %v1590_v37 = vsel %vm1531_vm10, %v1588_v32, 0 }
 0x388   : > { %v1215_v40 = vmax.f32 %v1213_v38, 0.0  ;;  %v2537_v38 = vld [vmem:[#allocation18] sm:$0xff]  }
 0x38a   : > { %v1216_v42 = vpack.c.bf16 %v1215_v40, %v1214_v39  ;;  %v2538_v39 = vld [vmem:[#allocation18 + $0x8] sm:$0xff]   ;;  %v1731_v40 = vld [vmem:[#allocation23] sm:$0xff] }
 0x38c   : > { %v1218_v43 = vrot.slane %v1216_v42, 4  ;;  %2215 = vmatmul.mubr.msk.bf16.vlgmr.msra.gmra.mrb[8].mxu0 %vm998_vm9, %v1216_v42  ;;  %v1733_v42 = vld [vmem:[#allocation23 + $0x10] sm:$0xff] }
 0x38d   : > { %2219 = vmatpush3.bf16.msra.mxu0 %v2531_v41  ;;  %2222 = vmatprep.mubr.msk.bf16.mxu0 %vm3027_vm0, %v3026_v0  ;;  %v1732_v41 = vld [vmem:[#allocation23 + $0x8] sm:$0xff] }
 0x38e   : > { %1220 = vst.msk [vmem:[#allocation2] sm:$0xf0] %vm745_vm2, %v1218_v43  ;;  %2220 = vmatprep.subr.bf16.mxu0 %v3026_v0 }
 0x38f   : > { %1221 = vst.msk [vmem:[#allocation2 + $0x8] sm:$0xf] %vm743_vm1, %v1218_v43  ;;  %v3029_v43 = vmov 0.0|0.0  }
 0x391   : > { %2221 = vmatpush3.bf16.msra.mxu0 %v2532_v44  ;;  %v2298_v44 = vpack.c.bf16 %v1732_v41, %v1731_v40 }
 0x392   : > { %2226 = vmatprep.subr.bf16.mxu0 %v3026_v0 }
 0x395   : > { %v1222_v45 = vld [vmem:[#allocation2] sm:$0xf8] }
 0x396   : > { %v1223_v46 = vld [vmem:[#allocation2 + $0x8] sm:$0xf]  ;;  %v1292_v47 = vshrl.u32 %v1222_v45, 16  ;;  %v1295_v49 = vshll.u32 %v1222_v45, 16  ;;  %v1224_v59 = vld [vmem:[#allocation2] sm:$0xf0] }
 0x397   : > { %v1300_v50 = vshrl.u32 %v1223_v46, 16  ;;  %v1303_v54 = vshll.u32 %v1223_v46, 16  ;;  %v1225_v60 = vld [vmem:[#allocation2 + $0x8] sm:$0x1f]  ;;  %v1370_v1 = vshrl.u32 %v1224_v59, 16  ;;  %v1373_v3 = vshll.u32 %v1224_v59, 16 }
 0x398   : > { %v1294_v55 = vrot.slane %v1292_v47, 3  ;;  %v1297_v56 = vrot.slane %v1295_v49, 4  ;;  %v1378_v4 = vshrl.u32 %v1225_v60, 16  ;;  %v1381_v5 = vshll.u32 %v1225_v60, 16  ;;  %v1734_v45 = vld [vmem:[#allocation23 + $0x18] sm:$0xff] }
 0x399   : > { %v1302_v57 = vrot.slane %v1300_v50, 3  ;;  %v1305_v58 = vrot.slane %v1303_v54, 4  ;;  %v1372_v7 = vrot.slane %v1370_v1, 4  ;;  %v1375_v8 = vrot.slane %v1373_v3, 5 }
 0x39a   : > { %v1298_v61 = vor.u32 %v1297_v56, %v1294_v55  ;;  %v1380_v9 = vrot.slane %v1378_v4, 4  ;;  %v1383_v10 = vrot.slane %v1381_v5, 5  ;;  %v2301_v46 = vpack.c.bf16 %v1734_v45, %v1733_v42 }
 0x39b   : > { %v1306_v62 = vor.u32 %v1305_v58, %v1302_v57  ;;  %v1376_v11 = vor.u32 %v1375_v8, %v1372_v7 }
 0x39c   : > { %v1384_v12 = vor.u32 %v1383_v10, %v1380_v9 }
 0x39d   : > { %v1307_v2 = vsel %vm813_vm7, %v1298_v61, %v1306_v62 }
 0x39e   : > { %2223 = vmatmul.mubr.msk.bf16.vlgmr.msra.gmra.mrb[8].mxu0 %vm998_vm9, %v1307_v2  ;;  %v1385_v13 = vsel %vm880_vm8, %v1376_v11, %v1384_v12  ;;  %v1735_v12 = vld [vmem:[#allocation23 + $0x20] sm:$0xff] }
 0x39f   : > { %2227 = vmatpush3.bf16.msra.mxu0 %v2533_v63  ;;  %2230 = vmatprep.mubr.msk.bf16.mxu0 %vm3027_vm0, %v3026_v0 }
 0x3a0   : > { %2228 = vmatprep.subr.bf16.mxu0 %v3026_v0 }
 0x3a3   : > { %2229 = vmatpush3.bf16.msra.mxu0 %v2534_v6 }
 0x3a4   : > { %2254 = vmatprep.subr.bf16.mxu0 %v3026_v0 }
 0x3aa   : > { %2231 = vmatmul.mubr.msk.bf16.vlgmr.msra.gmra.mrb[8].mxu0 %vm998_vm9, %v1385_v13  ;;  %v1736_v13 = vld [vmem:[#allocation23 + $0x28] sm:$0xff] }
 0x3ab   : > { %2258 = vmatprep.mubr.msk.bf16.mxu0 %vm3027_vm0, %v3026_v0  ;;  %2255 = vmatpush3.bf16.msra.mxu0 %v2537_v38  ;;  %v2304_v14 = vpack.c.bf16 %v1736_v13, %v1735_v12 }
 0x3ac   : > { %2256 = vmatprep.subr.bf16.mxu0 %v3026_v0 }
 0x3af   : > { %2257 = vmatpush3.bf16.msra.mxu0 %v2538_v39 }
 0x47d   : > { %v1435_v17 = vpop.f32.mrb[8].mxu0 }
 0x47e   : > { %v1451_v18 = vmul.f32 %v2099_v16, %v1435_v17  ;;  %v2232_v19 = vpop.f32.mrb[9].mxu0  ;;  %v1741_v17 = vld [vmem:[#allocation23 + $0x50] sm:$0xff] }
 0x47f   : > { %v1438_v21 = vpop.f32.mrb[10].mxu0 }
 0x480   : > { %v1452_v22 = vmul.f32 %v2099_v16, %v1438_v21  ;;  %v2233_v23 = vpop.f32.mrb[11].mxu0  ;;  %v1460_v25 = vadd.f32 %v2100_v20, %v1451_v18  ;;  %v1742_v18 = vld [vmem:[#allocation23 + $0x58] sm:$0xff]  ;;  %v1744_v21 = vld [vmem:[#allocation23 + $0x68] sm:$0xff] }
 0x481   : > { %v2313_v19 = vpack.c.bf16 %v1742_v18, %v1741_v17  ;;  %v1745_v23 = vld [vmem:[#allocation23 + $0x70] sm:$0xff] }
 0x482   : > { %v1461_v26 = vadd.f32 %v2100_v20, %v1452_v22  ;;  %v1743_v20 = vld [vmem:[#allocation23 + $0x60] sm:$0xff] }
 0x483   : > { %v2316_v22 = vpack.c.bf16 %v1744_v21, %v1743_v20 }
 0x484   : > { %v1462_v27 = vpack.c.bf16 %v1461_v26, %v1460_v25 }
 0x486   : > { %2239 = vmatmul.mubr.msk.bf16.vlgmr.msra.gmra.mrb[4].mxu1 %vm998_vm9, %v1462_v27 }
 0x487   : > { %2243 = vmatpush3.bf16.msra.mxu1 %v1533_v28  ;;  %2244 = vmatprep.mubr.msk.bf16.mxu1 %vm3027_vm0, %v3026_v0  ;;  %v2112_v28 = vld [vmem:[#allocation21] ss:$0 sm:$0xff] }
 0x488   : > { %2248 = vmatprep.subr.bf16.mxu1 %v3026_v0 }
 0x559   : > { %v1516_v29 = vpop.f32.mrb[4].mxu1 }
 0x55a   : > { %v2240_v30 = vpop.f32.mrb[5].mxu1  ;;  %v1523_v33 = vmax.f32 %v1516_v29, 0.0 }
 0x55b   : > { %v1519_v31 = vpop.f32.mrb[6].mxu1 }
 0x55c   : > { %v1524_v34 = vmax.f32 %v1519_v31, 0.0  ;;  %v2241_v35 = vpop.f32.mrb[7].mxu1 }
 0x55e   : > { %v1525_v36 = vpack.c.bf16 %v1524_v34, %v1523_v33 }
 0x560   : > { %2245 = vmatmul.mubr.msk.bf16.vlgmr.msra.gmra.mrb[8].mxu1 %vm1527_vm11, %v1525_v36 }
 0x561   : > { %2249 = vmatpush3.bf16.msra.mxu1 %v1590_v37  ;;  %2250 = vmatprep.mubr.msk.bf16.mxu1 %vm3027_vm0, %v3026_v0 }
 0x562   : > { %2297 = vmatprep.subr.bf16.mxu1 %v3029_v43 }
 0x568   : > { %2251 = vmatmul.mubr.msk.bf16.vlgmr.msra.gmra.mrb[12].mxu1 %vm1527_vm11, %v1525_v36 }
 0x569   : > { %2294 = vmatprep.mubr.msk.f32.mxu1 %vm3027_vm0, %v3026_v0  ;;  %2299 = vmatpush3.bf16.msra.mxu1 %v2298_v44 }
 0x56a   : > { %2300 = vmatprep.subr.bf16.mxu1 %v3029_v43 }
 0x56d   : > { %2302 = vmatpush3.bf16.msra.mxu1 %v2301_v46  ;;  %v1747_v46 = vld [vmem:[%s3752_s29] sm:$0x1] }
 0x56e   : > { %2303 = vmatprep.subr.bf16.mxu1 %v3029_v43 }
 0x571   : > { %2305 = vmatpush3.bf16.msra.mxu1 %v2304_v14 }
 0x572   : > { %2306 = vmatprep.subr.bf16.mxu1 %v3029_v43 }
 0x633   : > { %v1569_v47 = vpop.f32.mrb[8].mxu1 }
 0x634   : > { %v2105_v49 = vmul.f32 -1.442695, %v1569_v47  ;;  %v2246_v0 = vpop.f32.mrb[9].mxu1 }
 0x635   : > { %v1572_v50 = vpop.f32.mrb[10].mxu1 }
 0x636   : > { %2539 = vpow2.f32 %v2105_v49  ;;  %v2106_v54 = vmul.f32 -1.442695, %v1572_v50  ;;  %v2247_v55 = vpop.f32.mrb[11].mxu1 }
 0x638   : > { %2541 = vpow2.f32 %v2106_v54 }
 0x63b   : > { %v1626_v56 = vpop.f32.mrb[12].mxu1 }
 0x63c   : > { %v2252_v57 = vpop.f32.mrb[13].mxu1 }
 0x63d   : > { %v1629_v58 = vpop.f32.mrb[14].mxu1 }
 0x63e   : > { %v2253_v59 = vpop.f32.mrb[15].mxu1 }
 0x640   : > { %v2540_v60 = vpop.eup %2539 }
 0x641   : > { %v1582_v61 = vadd.f32 1.0, %v2540_v60 }
 0x642   : > { %v2542_v62 = vpop.eup %2541 }
 0x643   : > { %2543 = vrcp.f32 %v1582_v61  ;;  %v1583_v63 = vadd.f32 1.0, %v2542_v62 }
 0x645   : > { %2545 = vrcp.f32 %v1583_v63 }
 0x64d   : > { %v2544_v1 = vpop.eup %2543 }
 0x64e   : > { %v1633_v2 = vmul.f32 %v2544_v1, %v1460_v25  ;;  %v2319_v25 = vpack.c.bf16 %v1746_v24, %v1745_v23 }
 0x64f   : > { %v2546_v3 = vpop.eup %2545 }
 0x650   : > { %v1635_v4 = vadd.f32 %v1633_v2, %v965_v52  ;;  %v1634_v5 = vmul.f32 %v2546_v3, %v1461_v26  ;;  %v2307_v52 = vpack.c.bf16 %v1738_v48, %v1737_v15  ;;  %v2111_v26 = vld [vmem:[#allocation20] ss:$0 sm:$0xff] }
 0x652   : > { %v1637_v6 = vadd.f32 %v1635_v4, %v1626_v56  ;;  %v1636_v7 = vadd.f32 %v1634_v5, %v966_v53  ;;  %2308 = vmatpush3.bf16.msra.mxu1 %v2307_v52  ;;  %v1740_v53 = vld [vmem:[#allocation23 + $0x48] sm:$0xff] }
 0x653   : > { %2309 = vmatprep.subr.bf16.mxu1 %v3029_v43  ;;  %v2310_v16 = vpack.c.bf16 %v1740_v53, %v1739_v51 }
 0x654   : > { %v1638_v8 = vadd.f32 %v1636_v7, %v1629_v58  ;;  %v1639_v9 = vmax.f32 %v1637_v6, 0.0 }
 0x656   : > { %v1640_v10 = vmax.f32 %v1638_v8, 0.0  ;;  %2311 = vmatpush3.bf16.msra.mxu1 %v2310_v16 }
 0x657   : > { %2312 = vmatprep.subr.bf16.mxu1 %v3029_v43 }
 0x658   : > { %v1641_v11 = vpack.c.bf16 %v1640_v10, %v1639_v9 }
 0x65a   : > { %2259 = vmatmul.mubr.msk.bf16.vlgmr.msra.gmra.mrb[12].mxu0 %vm998_vm9, %v1641_v11  ;;  %2314 = vmatpush3.bf16.msra.mxu1 %v2313_v19 }
 0x65b   : > { %2315 = vmatprep.subr.bf16.mxu1 %v3029_v43 }
 0x65e   : > { %2317 = vmatpush3.bf16.msra.mxu1 %v2316_v22 }
 0x65f   : > { %2318 = vmatprep.subr.bf16.mxu1 %v3029_v43 }
 0x662   : > { %2320 = vmatpush3.bf16.msra.mxu1 %v2319_v25 }
 0x72d   : > { %v1695_v27 = vpop.f32.mrb[12].mxu0 }
 0x72e   : > { %v1709_v29 = vmul.f32 %v2111_v26, %v1695_v27  ;;  %v2260_v30 = vpop.f32.mrb[13].mxu0 }
 0x72f   : > { %v1698_v31 = vpop.f32.mrb[14].mxu0 }
 0x730   : > { %v1718_v32 = vadd.f32 %v2112_v28, %v1709_v29  ;;  %v1710_v33 = vmul.f32 %v2111_v26, %v1698_v31  ;;  %v2261_v34 = vpop.f32.mrb[15].mxu0 }
 0x732   : > { %v1719_v35 = vadd.f32 %v2112_v28, %v1710_v33  ;;  %v1720_v36 = vmax.f32 %v1718_v32, 0.0 }
 0x734   : > { %v1721_v37 = vmax.f32 %v1719_v35, 0.0 }
 0x736   : > { %v1722_v38 = vadd.f32 %v1721_v37, %v1720_v36 }
 0x738   : > { %v1723_v39 = vrot.slane %v1722_v38, 4 }
 0x73a   : > { %v1724_v40 = vadd.f32 %v1723_v39, %v1722_v38 }
 0x73c   : > { %v1725_v41 = vrot.slane %v1724_v40, 2 }
 0x73e   : > { %v1726_v42 = vadd.f32 %v1725_v41, %v1724_v40 }
 0x740   : > { %v1727_v44 = vrot.slane %v1726_v42, 1 }
 0x742   : > { %v1728_v43 = vadd.f32 %v1727_v44, %v1726_v42 }
 0x744   : > { %v1730_v45 = vmul.f32 0.0625, %v1728_v43 }
 0x746   : > { %2295 = vmatmul.mubr.f32.vlgmr.msra.gmra.mrb[16].mxu1 %v1730_v45 }
 0x819   : > { %v1814_v47 = vpop.f32.mrb[16].mxu1 }
 0x81a   : > { %v1815_v49 = vadd.f32 %v1814_v47, %v1747_v46  ;;  %v2296_v0 = vpop.f32.mrb[17].mxu1 }
 0x81c   : > { %v1819_v50 = vsel %vm1818_vm12, %v1815_v49, -inf }
 0x81d   : > { %1820 = vmax.xlane.f32.xlu0 %v1819_v50 }
 0x8aa   : > { %v1821_v54 = vpop.xlane.xlu0 %1820 }
 0x8ab   : > { %v1822_v55 = vsub.f32 %v1815_v49, %v1821_v54 }
 0x8ad   : > { %v1823_v56 = vmul.f32 1.442695, %v1822_v55 }
 0x8af   : > { %2547 = vpow2.f32 %v1823_v56 }
 0x8b9   : > { %v2548_v57 = vpop.eup %2547 }
 0x8ba   : > { %v1825_v58 = vsel %vm1818_vm12, %v2548_v57, 0.0 }
 0x8bb   : > { %1826 = vadd.xlane.f32.xlu0 %v1825_v58 }
 0x948   : > { %v1827_v59 = vpop.xlane.xlu0 %1826 }
 0x949   : > { %2549 = vlog2.f32 %v1827_v59 }
 0x953   : > { %v2550_v60 = vpop.eup %2549 }
 0x954   : > { %v1829_v61 = vmul.f32 0.6931472, %v2550_v60 }
 0x956   : > { %v1830_v62 = vsub.f32 %v1822_v55, %v1829_v61 }
 0x958   : > { %1831 = vst.msk [vmem:[%s736_s11] sm:$0x1] %vm1818_vm12, %v1830_v62 }
 0x959   : > { %2928 = shalt.err (!%p2925_p3)
}
 0x95a   : > { %s2929_s22 = scalar_lea.hbm %s3629_s26, 16  ;;  %s2933_s8 = scalar_lea.hbm %s3755_s1, 32 }
 0x95b   : > { %p2930_p4 = scmp.ne.s32.totalorder %s3629_s26, %s2929_s22  ;;  %p2934_p11 = scmp.lt.u32.totalorder %s3629_s26, %s3755_s1 }
 0x95c   : > { %p2935_p13 = scmp.lt.u32.totalorder %s2933_s8, %s2929_s22  ;;  %p2937_p0 = scmp.lt.u32.totalorder %s2929_s22, %s3629_s26 }
 0x95d   : > { %p2931_p7 = pnand %p2930_p4, %p3756_p6 }
 0x95e   : > { %p2936_p1 = por %p2935_p13, %p2934_p11 }
 0x95f   : > { %p2932_p8 = pneg %p2931_p7 }
 0x960   : > { %p2938_p5 = por %p2937_p0, %p2936_p1 }
 0x962   : > { %p2939_p9 = pnand %p2938_p5, %p2932_p8 }
 0x964   : > { %2942 = shalt.err (!%p2939_p9)
}
 0x965   : > { %2395 = dma.vmem_to_hbm [thread:$0]  (%p3756_p6), %s3631_s25, 16, %s3629_s26, %s1833_s20  }
 0x966 PF: > { %s3757_s21 = sld [smem:[#allocation36_spill]]  ;;  %s3758_s19 = sld [smem:[#allocation33_spill]] }
 0x967   : > { %s3759_s11 = sld [smem:[#allocation40_spill]] }
 0x96c   : > { %p2467_p12 = scmp.ge.s32.totalorder %s3757_s21, 2  ;;  %s1857_s5 = sand.u32 1, %s3758_s19  }
 0x96d   : > { %p3760_p10 = scmp.ne.s32.totalorder %s3759_s11, 0  ;;  %s1858_s2 = scalar_lea.sflag [#allocation5], %s1857_s5 }
 0x96f   : > { %p2438_p2 = pnand %p2467_p12, %p3760_p10 }
 0x971   : > { %2988 = dma.done.wait (!%p2438_p2), %s1858_s2, 16  }
 0x972   : > { %2990 = vsyncadd (!%p2438_p2), %s1858_s2, 4294967280  ;;  %s3761_s30 = sld [smem:[#allocation37_spill]]  ;;  %s3762_s27 = sld [smem:[#allocation34_spill]] }
 0x973   : > { %s3763_s28 = sld [smem:[#allocation35_spill]]  ;;  %s3764_s29 = sld [smem:[#allocation38_spill]] }
 0x978   : > { %p35_p3 = scmp.ge.s32.totalorder %s3761_s30, 4  }
 0x97a   :  { %37 = sbr.rel (!%p35_p3) target bundleno = 20 (0x14), region = 186 }
 0x981   :  { %1862 = vsyncpa [#allocation4], 1 }
 0x982   :  { %1864 = vsyncpa [#allocation4 + $0x1], 1 }
 0x983   :  { %1865 = vsyncpa [#allocation7], 1 }
 0x984   :  { %1866 = vsyncpa [#allocation10], 1 }
 0x985   :  { %1867 = vsyncpa [#allocation13], 1 }
 0x986   :  { %1868 = vsyncpa [#allocation16], 1 }
 0x987   :  { %1869 = vsyncpa [#allocation19], 1 }
 0x988   :  { %1870 = vsyncpa [#allocation22], 1 }
 0x989   :  { %1871 = vsyncpa [#allocation5], 1 }
 0x98a   :  { %1873 = vsyncpa [#allocation5 + $0x1], 1 }

</bundles_post_ra>
